<compile_context>
chip_gen: v7x
topology: tpu7x:2x2x1
jax: 0.10.0
libtpu: 0.0.40
codegen_flags: <defaults>
</compile_context>

<pallas_src>
import math
import functools

import numpy as np
import jax
import jax.numpy as jnp
from jax import lax
from jax.experimental import pallas as pl
from jax.experimental.pallas import tpu as pltpu


# ----------------------------- kernel helpers -----------------------------

def _layernorm(x, g, b, eps=1e-5):
    # fp32 LayerNorm (matches the fp32-upcasting LayerNorm), biased variance.
    mu = jnp.mean(x, axis=-1, keepdims=True)
    var = jnp.mean(jnp.square(x - mu), axis=-1, keepdims=True)
    return (x - mu) * lax.rsqrt(var + eps) * g + b


def _gelu(x, approximate=False):
    if approximate:
        # Optional tanh approximation (EUP) — changes numerics vs nn.GELU().
        return jax.nn.gelu(x, approximate=True)
    # nn.GELU() default = exact erf-based GELU.
    return 0.5 * x * (1.0 + lax.erf(x * (1.0 / math.sqrt(2.0))))


# ------------------------------ Pallas kernel ------------------------------

def transformer_kernel(x_ref,
                       wqkv_ref, bqkv_ref, wproj_ref, bproj_ref,
                       ln1g_ref, ln1b_ref, ln2g_ref, ln2b_ref,
                       wfc_ref, bfc_ref, wfp_ref, bfp_ref,
                       o_ref,
                       attn_scr, h2_scr, acc_scr,
                       *, n_heads, approx_recip, approx_gelu):
    """Grid = (batch_tiles, layers, mlp_hidden_chunks).

    x_ref / o_ref : (Bt, T, W)     o_ref = layer-resident residual stream
    wqkv_ref      : (1, W, 3W)     columns permuted to [Q | K | V], head-major
    wproj_ref     : (1, W, W)
    wfc_ref       : (1, W, hc)     hidden-chunk slice (streamed via grid axis 2)
    wfp_ref       : (1, hc, W)     hidden-chunk slice
    biases / LN   : (1, 1, N)      (bfc is the (1,1,hc) chunk slice)
    attn_scr      : VMEM (Bt, T, W)  mm_dtype   per-head attention outputs
    h2_scr        : VMEM (Bt*T, W)   mm_dtype   ln_2 activations for the chunks
    acc_scr       : VMEM (Bt*T, W)   fp32       post-attn residual + MLP accum
    """
    l = pl.program_id(1)
    ci = pl.program_id(2)
    n_chunks = pl.num_programs(2)

    mm_dtype = wqkv_ref.dtype                    # bf16 or f32 matmul operands

    # Layer 0, chunk 0: seed the resident residual stream from the input block.
    @pl.when(jnp.logical_and(l == 0, ci == 0))
    def _seed():
        o_ref[...] = x_ref[...]

    # ------------- chunk 0: attention branch + ln_2, seed MLP state ----------
    @pl.when(ci == 0)
    def _attention_and_ln2():
        xb = o_ref[...].astype(jnp.float32)      # (Bt, T, W) residual, fp32
        Bt, T, W = xb.shape
        c = W // n_heads
        scale2 = 1.0 / math.sqrt(c)              # folded (1/ch^0.25)^2 onto q
        x2 = xb.reshape(Bt * T, W)               # M = Bt*T rows for the MXU

        h = _layernorm(x2, ln1g_ref[0], ln1b_ref[0])
        qkv = jnp.dot(h.astype(mm_dtype), wqkv_ref[0],
                      preferred_element_type=jnp.float32) + bqkv_ref[0]  # (M, 3W)

        for hh in range(n_heads):
            # head-major layout -> contiguous per-head slices
            q = (qkv[:, hh * c:(hh + 1) * c] * scale2).reshape(Bt, T, c)
            k = qkv[:, W + hh * c:W + (hh + 1) * c].reshape(Bt, T, c)
            v = qkv[:, 2 * W + hh * c:2 * W + (hh + 1) * c].reshape(Bt, T, c)

            # scores: contract last dims, batched over Bt (no explicit k.T)
            s = jnp.einsum("btc,bsc->bts", q.astype(mm_dtype), k.astype(mm_dtype),
                           preferred_element_type=jnp.float32)
            s = s - jnp.max(s, axis=-1, keepdims=True)
            e = jnp.exp(s)
            p = e * pl.reciprocal(jnp.sum(e, axis=-1, keepdims=True),
                                  approx=approx_recip)
            o_h = jnp.einsum("bts,bsc->btc", p.astype(mm_dtype), v.astype(mm_dtype),
                             preferred_element_type=jnp.float32)        # (Bt,T,c)
            # head output stored in mm_dtype (halves scratch VMEM + bandwidth)
            attn_scr[:, :, hh * c:(hh + 1) * c] = o_h.astype(mm_dtype)

        av = attn_scr[...].reshape(Bt * T, W)
        x2 = x2 + jnp.dot(av, wproj_ref[0],
                          preferred_element_type=jnp.float32) + bproj_ref[0]

        # Seed MLP accumulator with post-attention residual + final MLP bias
        # (added once per layer); stash ln_2 activations for the chunk loop.
        acc_scr[...] = x2 + bfp_ref[0]
        h2_scr[...] = _layernorm(x2, ln2g_ref[0], ln2b_ref[0]).astype(mm_dtype)

    # ---------------- every chunk: streamed MLP hidden slice -----------------
    f = (jnp.dot(h2_scr[...], wfc_ref[0], preferred_element_type=jnp.float32)
         + bfc_ref[0])
    f = _gelu(f, approximate=approx_gelu)
    acc_scr[...] += jnp.dot(f.astype(mm_dtype), wfp_ref[0],
                            preferred_element_type=jnp.float32)

    # ---------------- last chunk: commit the layer's residual ----------------
    @pl.when(ci == n_chunks - 1)
    def _finish_layer():
        Bt, T, W = o_ref.shape
        o_ref[...] = acc_scr[...].reshape(Bt, T, W).astype(o_ref.dtype)


# ------------------------------ wrapper / glue ------------------------------

def _device_defaults():
    """Generation-aware defaults for rows-per-step and the VMEM limit."""
    kind = ""
    try:
        kind = jax.devices()[0].device_kind.lower()
    except Exception:
        pass
    if "v5" in kind:
        # v5e: MXU/HBM ratio balances near M~256-384; 128 MiB physical VMEM.
        return dict(target_rows=320, vmem_limit=96 * 2 ** 20, min_tiles=1)
    if "v6" in kind:
        # v6e: bf16 MXU roofline needs M~650+; 128 MiB physical VMEM.
        return dict(target_rows=896, vmem_limit=100 * 2 ** 20, min_tiles=1)
    if "v7" in kind or "7x" in kind:
        # v7x: 64 MiB VMEM / TC, 2 TCs -> keep >=2 batch tiles for megacore.
        return dict(target_rows=576, vmem_limit=56 * 2 ** 20, min_tiles=2)
    # Unknown / older: conservative (matches the previously validated config).
    return dict(target_rows=512, vmem_limit=48 * 2 ** 20, min_tiles=1)


def _pick_hidden_chunk(hidden, target=1024):
    """Largest divisor of `hidden` that is a multiple of 128 and <= target."""
    if hidden <= target:
        return hidden
    d = (target // 128) * 128
    while d >= 128:
        if hidden % d == 0:
            return d
        d -= 128
    return hidden   # no lane-dense divisor; keep the hidden dim whole


def _estimate_vmem_bytes(block_b, T, W, hc, mm_bytes, x_bytes, n_heads):
    """Rough per-step VMEM footprint used to size block_b."""
    M = block_b * T
    w = 2 * (4 * W * W) * mm_bytes               # wqkv+wproj, double-buffered
    w += 2 * 2 * (W * hc) * mm_bytes             # wfc/wfp chunk, double-buffered
    w += 2 * (3 * W + 4 * W + 2 * hc) * 4        # biases / LN params
    io = 2 * M * W * x_bytes + M * W * x_bytes   # x block (dbl-buf) + out block
    scratch = M * W * (4 + 2 * mm_bytes)         # acc fp32 + h2/attn mm_dtype
    live = M * 3 * W * 4                         # fp32 qkv
    live += 2 * block_b * T * T * 4              # live per-head score tensors
    live += 2 * M * hc * 4                       # GELU chunk intermediates
    live += M * W * 4                            # residual / x2
    return w + io + scratch + live


def _pick_block_b(B, T, W, hc, mm_bytes, x_bytes, n_heads,
                  target_rows, vmem_budget, min_tiles=1):
    divisors = [d for d in range(1, B + 1) if B % d == 0]
    cands = [d for d in divisors
             if d * T <= max(T, target_rows) and (B // d) >= min(min_tiles, B)]
    bb = max(cands) if cands else 1
    while bb > 1 and _estimate_vmem_bytes(bb, T, W, hc, mm_bytes, x_bytes,
                                          n_heads) > 0.85 * vmem_budget:
        smaller = [d for d in divisors if d < bb]
        bb = max(smaller) if smaller else 1
    return bb


def _qkv_perm(width, n_heads):
    """new-column -> original-column map: interleaved [q_h|k_h|v_h] -> [Q|K|V]."""
    c = width // n_heads
    perm = np.empty(3 * width, dtype=np.int32)
    i = 0
    for comp in range(3):            # 0=q, 1=k, 2=v
        for h in range(n_heads):
            for ch in range(c):
                perm[i] = h * 3 * c + comp * c + ch
                i += 1
    return perm


def prepare_params(layer_params, n_heads, mm_dtype=jnp.bfloat16):
    """Stack per-layer PyTorch-style params into kernel-ready (L, ...) arrays."""
    W = layer_params[0]["wproj"].shape[0]
    perm = jnp.asarray(_qkv_perm(W, n_heads))

    def stack(fn):
        return jnp.stack([fn(p) for p in layer_params], axis=0)

    return {
        "wqkv_t": stack(lambda p: p["wqkv"].T[:, perm]).astype(mm_dtype),  # (L,W,3W)
        "bqkv":   stack(lambda p: p["bqkv"][perm][None, :]),               # (L,1,3W)
        "wproj_t": stack(lambda p: p["wproj"].T).astype(mm_dtype),         # (L,W,W)
        "bproj":  stack(lambda p: p["bproj"][None, :]),                    # (L,1,W)
        "ln1_g":  stack(lambda p: p["ln1_g"][None, :]),
        "ln1_b":  stack(lambda p: p["ln1_b"][None, :]),
        "ln2_g":  stack(lambda p: p["ln2_g"][None, :]),
        "ln2_b":  stack(lambda p: p["ln2_b"][None, :]),
        "wfc_t":  stack(lambda p: p["wfc"].T).astype(mm_dtype),            # (L,W,4W)
        "bfc":    stack(lambda p: p["bfc"][None, :]),                      # (L,1,4W)
        "wfp_t":  stack(lambda p: p["wfp"].T).astype(mm_dtype),            # (L,4W,W)
        "bfp":    stack(lambda p: p["bfp"][None, :]),                      # (L,1,W)
    }


def transformer_forward(x, stacked, n_heads, *, block_b=None, hidden_chunk=None,
                        vmem_limit_bytes=None, target_rows=None,
                        approx_gelu=False):
    B, T, W = x.shape
    L = stacked["wqkv_t"].shape[0]
    assert W % n_heads == 0

    mm_dtype = stacked["wqkv_t"].dtype
    mm_bytes = np.dtype(mm_dtype).itemsize
    x_bytes = np.dtype(x.dtype).itemsize
    mm_is_f32 = np.dtype(mm_dtype) == np.dtype(np.float32)

    dflt = _device_defaults()
    if vmem_limit_bytes is None:
        vmem_limit_bytes = dflt["vmem_limit"]
    if target_rows is None:
        target_rows = dflt["target_rows"]

    if hidden_chunk is None:
        hidden_chunk = _pick_hidden_chunk(4 * W)
    assert (4 * W) % hidden_chunk == 0
    n_chunks = (4 * W) // hidden_chunk

    if block_b is None:
        block_b = _pick_block_b(B, T, W, hidden_chunk, mm_bytes, x_bytes, n_heads,
                                target_rows, vmem_limit_bytes, dflt["min_tiles"])
    assert B % block_b == 0
    n_tiles = B // block_b

    names = ["wqkv_t", "bqkv", "wproj_t", "bproj",
             "ln1_g", "ln1_b", "ln2_g", "ln2_b",
             "wfc_t", "bfc", "wfp_t", "bfp"]
    args = [stacked[n] for n in names]

    # Per-layer params follow only the layer grid axis (fetched once per
    # (batch tile, layer), double-buffered); MLP weights follow the hidden-chunk
    # axis too, so they are streamed slice-by-slice instead of held resident.
    def layer_spec(a):
        return pl.BlockSpec((1,) + a.shape[1:], lambda bi, l, ci: (l, 0, 0))

    in_specs = [pl.BlockSpec((block_b, T, W), lambda bi, l, ci: (bi, 0, 0))]
    for n, a in zip(names, args):
        if n == "wfc_t":
            in_specs.append(pl.BlockSpec((1, W, hidden_chunk),
                                         lambda bi, l, ci: (l, 0, ci)))
        elif n == "bfc":
            in_specs.append(pl.BlockSpec((1, 1, hidden_chunk),
                                         lambda bi, l, ci: (l, 0, ci)))
        elif n == "wfp_t":
            in_specs.append(pl.BlockSpec((1, hidden_chunk, W),
                                         lambda bi, l, ci: (l, ci, 0)))
        else:
            in_specs.append(layer_spec(a))

    # Advisory cost estimate so XLA schedules around the fused custom call.
    matmul_flops = 2 * B * T * 12 * W * W * L
    attn_flops = 4 * B * T * T * W * L
    transcendentals = L * B * T * (n_heads * T + 4 * W)
    weight_bytes = L * n_tiles * (12 * W * W + 8 * W) * mm_bytes
    act_bytes = 2 * B * T * W * x_bytes
    cost = pl.CostEstimate(flops=matmul_flops + attn_flops,
                           transcendentals=transcendentals,
                           bytes_accessed=weight_bytes + act_bytes)

    kernel = functools.partial(transformer_kernel, n_heads=n_heads,
                               approx_recip=not mm_is_f32,
                               approx_gelu=approx_gelu)

    return pl.pallas_call(
        kernel,
        out_shape=jax.ShapeDtypeStruct((B, T, W), x.dtype),
        grid=(n_tiles, L, n_chunks),
        in_specs=in_specs,
        out_specs=pl.BlockSpec((block_b, T, W), lambda bi, l, ci: (bi, 0, 0)),
        scratch_shapes=[
            pltpu.VMEM((block_b, T, W), mm_dtype),       # per-head attn outputs
            pltpu.VMEM((block_b * T, W), mm_dtype),      # ln_2 activations
            pltpu.VMEM((block_b * T, W), jnp.float32),   # residual + MLP accum
        ],
        compiler_params=pltpu.CompilerParams(
            # NOTE: the layer & hidden-chunk axes must stay the trailing,
            # sequential ("arbitrary") axes — the residual stream lives in
            # o_ref (same block index) across them.
            dimension_semantics=("parallel", "arbitrary", "arbitrary"),
            vmem_limit_bytes=vmem_limit_bytes,
        ),
        cost_estimate=cost,
    )(x, *args)


# -------------------------- deterministic init -----------------------------

def init_layer_params(key, width):
    ks = jax.random.split(key, 8)
    std = 0.02
    # PyTorch-style (out, in) weights; biases nonzero to exercise bias paths.
    return {
        "wqkv":  jax.random.normal(ks[0], (3 * width, width), jnp.float32) * std,
        "bqkv":  jax.random.normal(ks[1], (3 * width,), jnp.float32) * std,
        "wproj": jax.random.normal(ks[2], (width, width), jnp.float32) * std,
        "bproj": jax.random.normal(ks[3], (width,), jnp.float32) * std,
        "ln1_g": jnp.ones((width,), jnp.float32),
        "ln1_b": jnp.zeros((width,), jnp.float32),
        "ln2_g": jnp.ones((width,), jnp.float32),
        "ln2_b": jnp.zeros((width,), jnp.float32),
        "wfc":   jax.random.normal(ks[4], (4 * width, width), jnp.float32) * std,
        "bfc":   jax.random.normal(ks[5], (4 * width,), jnp.float32) * std,
        "wfp":   jax.random.normal(ks[6], (width, 4 * width), jnp.float32) * std,
        "bfp":   jax.random.normal(ks[7], (width,), jnp.float32) * std,
    }


# ------------------------ pure-JAX reference (check) ------------------------

def _ref_block(x, p, n_heads):
    B, T, W = x.shape
    c = W // n_heads
    scale = 1.0 / math.sqrt(math.sqrt(c))

    def ln(h, g, b):
        mu = jnp.mean(h, -1, keepdims=True)
        var = jnp.mean((h - mu) ** 2, -1, keepdims=True)
        return (h - mu) / jnp.sqrt(var + 1e-5) * g + b

    h = ln(x, p["ln1_g"], p["ln1_b"])
    qkv = h @ p["wqkv"].T + p["bqkv"]
    qkv = qkv.reshape(B, T, n_heads, 3 * c)          # interleaved [q_h|k_h|v_h]
    q, k, v = qkv[..., :c], qkv[..., c:2 * c], qkv[..., 2 * c:]
    w = jnp.einsum("bthc,bshc->bhts", q * scale, k * scale)
    w = jax.nn.softmax(w, axis=-1)
    o = jnp.einsum("bhts,bshc->bthc", w, v).reshape(B, T, W)
    x = x + (o @ p["wproj"].T + p["bproj"])

    h2 = ln(x, p["ln2_g"], p["ln2_b"])
    ff = h2 @ p["wfc"].T + p["bfc"]
    ff = 0.5 * ff * (1.0 + lax.erf(ff / math.sqrt(2.0)))
    x = x + (ff @ p["wfp"].T + p["bfp"])
    return x


# ----------------------------------- main -----------------------------------

if __name__ == "__main__":
    def run_case(B, T, W, H, L, *, hidden_chunk=None, block_b=None):
        key = jax.random.PRNGKey(0)
        kx, *layer_keys = jax.random.split(key, L + 1)
        x = jax.random.normal(kx, (B, T, W), jnp.float32)
        layer_params = [init_layer_params(k, W) for k in layer_keys]

        # fp32 reference
        ref = x
        for p in layer_params:
            ref = _ref_block(ref, p, H)

        # 1) fp32 matmul mode: exactness check (exact reciprocal / erf GELU)
        out32 = transformer_forward(
            x, prepare_params(layer_params, H, jnp.float32), H,
            hidden_chunk=hidden_chunk, block_b=block_b)
        out32 = jax.block_until_ready(out32)
        assert out32.shape == (B, T, W)
        assert jnp.allclose(out32, ref, atol=1e-4, rtol=1e-4), "fp32 mismatch"

        # 2) bf16 MXU-operand mode (production config): looser tolerance
        out16 = transformer_forward(
            x, prepare_params(layer_params, H, jnp.bfloat16), H,
            hidden_chunk=hidden_chunk, block_b=block_b)
        out16 = jax.block_until_ready(out16)
        assert jnp.allclose(out16, ref, atol=5e-2, rtol=5e-2), "bf16 mismatch"

    # Single MLP chunk, single batch tile.
    run_case(2, 8, 32, 4, 2)
    # Multi-chunk MLP (streamed weight slices) + multiple batch tiles.
    run_case(4, 8, 64, 4, 2, hidden_chunk=128, block_b=2)

    print("KERNEL_OK")
</pallas_src>

<mosaic_0001>
module attributes {stable_mosaic.version = 11 : i64} {
  func.func @transformer_kernel(%arg0: i32, %arg1: i32, %arg2: i32, %arg3: memref<2x8x32xf32, #tpu.memory_space<vmem>>, %arg4: memref<1x32x96xf32, #tpu.memory_space<vmem>>, %arg5: memref<1x1x96xf32, #tpu.memory_space<vmem>>, %arg6: memref<1x32x32xf32, #tpu.memory_space<vmem>>, %arg7: memref<1x1x32xf32, #tpu.memory_space<vmem>>, %arg8: memref<1x1x32xf32, #tpu.memory_space<vmem>>, %arg9: memref<1x1x32xf32, #tpu.memory_space<vmem>>, %arg10: memref<1x1x32xf32, #tpu.memory_space<vmem>>, %arg11: memref<1x1x32xf32, #tpu.memory_space<vmem>>, %arg12: memref<1x32x128xf32, #tpu.memory_space<vmem>>, %arg13: memref<1x1x128xf32, #tpu.memory_space<vmem>>, %arg14: memref<1x128x32xf32, #tpu.memory_space<vmem>>, %arg15: memref<1x1x32xf32, #tpu.memory_space<vmem>>, %arg16: memref<2x8x32xf32, #tpu.memory_space<vmem>>, %arg17: memref<2x8x32xf32, #tpu.memory_space<vmem>>, %arg18: memref<16x32xf32, #tpu.memory_space<vmem>>, %arg19: memref<16x32xf32, #tpu.memory_space<vmem>>) attributes {dimension_semantics = [#tpu.dimension_semantics<parallel>, #tpu.dimension_semantics<arbitrary>, #tpu.dimension_semantics<arbitrary>], iteration_bounds = array<i64: 1, 2, 1>, scalar_prefetch = 0 : i64, scratch_operands = 3 : i64, tpu.core_type = #tpu.core_type<tc>, window_params = [{transform_indices = @transform_0, window_bounds = array<i64: 2, 8, 32>}, {transform_indices = @transform_1, window_bounds = array<i64: 1, 32, 96>}, {transform_indices = @transform_2, window_bounds = array<i64: 1, 1, 96>}, {transform_indices = @transform_3, window_bounds = array<i64: 1, 32, 32>}, {transform_indices = @transform_4, window_bounds = array<i64: 1, 1, 32>}, {transform_indices = @transform_5, window_bounds = array<i64: 1, 1, 32>}, {transform_indices = @transform_6, window_bounds = array<i64: 1, 1, 32>}, {transform_indices = @transform_7, window_bounds = array<i64: 1, 1, 32>}, {transform_indices = @transform_8, window_bounds = array<i64: 1, 1, 32>}, {transform_indices = @transform_9, window_bounds = array<i64: 1, 32, 128>}, {transform_indices = @transform_10, window_bounds = array<i64: 1, 1, 128>}, {transform_indices = @transform_11, window_bounds = array<i64: 1, 128, 32>}, {transform_indices = @transform_12, window_bounds = array<i64: 1, 1, 32>}, {transform_indices = @transform_13, window_bounds = array<i64: 2, 8, 32>}]} {
    %c0_i32 = arith.constant 0 : i32
    %0 = arith.cmpi eq, %arg1, %c0_i32 : i32
    %c0_i32_0 = arith.constant 0 : i32
    %1 = arith.cmpi eq, %arg2, %c0_i32_0 : i32
    %2 = arith.andi %0, %1 : i1
    %3 = arith.extui %2 : i1 to i32
    %c0_i32_1 = arith.constant 0 : i32
    %4 = arith.cmpi ne, %3, %c0_i32_1 : i32
    scf.if %4 {
      %c0_24 = arith.constant 0 : index
      %c0_25 = arith.constant 0 : index
      %c0_26 = arith.constant 0 : index
      %33 = vector.load %arg3[%c0_24, %c0_25, %c0_26] : memref<2x8x32xf32, #tpu.memory_space<vmem>>, vector<2x8x32xf32>
      %c0_27 = arith.constant 0 : index
      %c0_28 = arith.constant 0 : index
      %c0_29 = arith.constant 0 : index
      %34 = vector.load %arg16[%c0_27, %c0_28, %c0_29] : memref<2x8x32xf32, #tpu.memory_space<vmem>>, vector<2x8x32xf32>
      tpu.vector_store %arg16[%c0_27, %c0_28, %c0_29], %33 {strides = array<i32>} : memref<2x8x32xf32, #tpu.memory_space<vmem>>, vector<2x8x32xf32>,
    } else {
    }
    %c0_i32_2 = arith.constant 0 : i32
    %5 = arith.cmpi eq, %arg2, %c0_i32_2 : i32
    %6 = arith.extui %5 : i1 to i32
    %c0_i32_3 = arith.constant 0 : i32
    %7 = arith.cmpi ne, %6, %c0_i32_3 : i32
    scf.if %7 {
      %c0_24 = arith.constant 0 : index
      %c0_25 = arith.constant 0 : index
      %c0_26 = arith.constant 0 : index
      %33 = vector.load %arg16[%c0_24, %c0_25, %c0_26] : memref<2x8x32xf32, #tpu.memory_space<vmem>>, vector<2x8x32xf32>
      %34 = vector.shape_cast %33 : vector<2x8x32xf32> to vector<16x32xf32>
      %c0_27 = arith.constant 0 : index
      %c0_28 = arith.constant 0 : index
      %c0_29 = arith.constant 0 : index
      %35 = vector.load %arg8[%c0_27, %c0_28, %c0_29] : memref<1x1x32xf32, #tpu.memory_space<vmem>>, vector<1x1x32xf32>
      %36 = vector.shape_cast %35 : vector<1x1x32xf32> to vector<1x32xf32>
      %c0_30 = arith.constant 0 : index
      %c0_31 = arith.constant 0 : index
      %c0_32 = arith.constant 0 : index
      %37 = vector.load %arg9[%c0_30, %c0_31, %c0_32] : memref<1x1x32xf32, #tpu.memory_space<vmem>>, vector<1x1x32xf32>
      %38 = vector.shape_cast %37 : vector<1x1x32xf32> to vector<1x32xf32>
      %cst_33 = arith.constant dense<0.000000e+00> : vector<16xf32>
      %39 = vector.multi_reduction <add>, %34, %cst_33 [1] : vector<16x32xf32> to vector<16xf32>
      %40 = vector.shape_cast %39 : vector<16xf32> to vector<16x1xf32>
      %cst_34 = arith.constant 3.200000e+01 : f32
      %41 = vector.broadcast %cst_34 : f32 to vector<16x1xf32>
      %42 = arith.divf %40, %41 : vector<16x1xf32>
      %43 = vector.broadcast %42 : vector<16x1xf32> to vector<16x32xf32>
      %44 = arith.subf %34, %43 : vector<16x32xf32>
      %45 = arith.mulf %44, %44 : vector<16x32xf32>
      %cst_35 = arith.constant dense<0.000000e+00> : vector<16xf32>
      %46 = vector.multi_reduction <add>, %45, %cst_35 [1] : vector<16x32xf32> to vector<16xf32>
      %47 = vector.shape_cast %46 : vector<16xf32> to vector<16x1xf32>
      %cst_36 = arith.constant 3.200000e+01 : f32
      %48 = vector.broadcast %cst_36 : f32 to vector<16x1xf32>
      %49 = arith.divf %47, %48 : vector<16x1xf32>
      %50 = vector.broadcast %42 : vector<16x1xf32> to vector<16x32xf32>
      %51 = arith.subf %34, %50 : vector<16x32xf32>
      %cst_37 = arith.constant 9.99999974E-6 : f32
      %52 = vector.broadcast %cst_37 : f32 to vector<16x1xf32>
      %53 = arith.addf %49, %52 : vector<16x1xf32>
      %54 = math.rsqrt %53 : vector<16x1xf32>
      %55 = vector.broadcast %54 : vector<16x1xf32> to vector<16x32xf32>
      %56 = arith.mulf %51, %55 : vector<16x32xf32>
      %57 = vector.broadcast %36 : vector<1x32xf32> to vector<16x32xf32>
      %58 = arith.mulf %56, %57 : vector<16x32xf32>
      %59 = vector.broadcast %38 : vector<1x32xf32> to vector<16x32xf32>
      %60 = arith.addf %58, %59 : vector<16x32xf32>
      %c0_38 = arith.constant 0 : index
      %c0_39 = arith.constant 0 : index
      %c0_40 = arith.constant 0 : index
      %61 = vector.load %arg4[%c0_38, %c0_39, %c0_40] : memref<1x32x96xf32, #tpu.memory_space<vmem>>, vector<1x32x96xf32>
      %62 = vector.shape_cast %61 : vector<1x32x96xf32> to vector<32x96xf32>
      %cst_41 = arith.constant dense<0.000000e+00> : vector<16x96xf32>
      %63 = tpu.matmul %60, %62, %cst_41 {dimension_numbers = #tpu.dot_dimension_numbers<[1], [0], [0], [1], [0, 0, 1, 1], [], []>} : vector<16x32xf32>, vector<32x96xf32>, vector<16x96xf32> -> vector<16x96xf32>
      %c0_42 = arith.constant 0 : index
      %c0_43 = arith.constant 0 : index
      %c0_44 = arith.constant 0 : index
      %64 = vector.load %arg5[%c0_42, %c0_43, %c0_44] : memref<1x1x96xf32, #tpu.memory_space<vmem>>, vector<1x1x96xf32>
      %65 = vector.shape_cast %64 : vector<1x1x96xf32> to vector<1x96xf32>
      %66 = vector.broadcast %65 : vector<1x96xf32> to vector<16x96xf32>
      %67 = arith.addf %63, %66 : vector<16x96xf32>
      %68 = vector.extract_strided_slice %67 {offsets = [0, 0], sizes = [16, 8], strides = [1, 1]} : vector<16x96xf32> to vector<16x8xf32>
      %cst_45 = arith.constant 0.353553385 : f32
      %69 = vector.broadcast %cst_45 : f32 to vector<16x8xf32>
      %70 = arith.mulf %68, %69 : vector<16x8xf32>
      %71 = vector.shape_cast %70 : vector<16x8xf32> to vector<2x8x8xf32>
      %72 = vector.extract_strided_slice %67 {offsets = [0, 32], sizes = [16, 8], strides = [1, 1]} : vector<16x96xf32> to vector<16x8xf32>
      %73 = vector.shape_cast %72 : vector<16x8xf32> to vector<2x8x8xf32>
      %74 = vector.extract_strided_slice %67 {offsets = [0, 64], sizes = [16, 8], strides = [1, 1]} : vector<16x96xf32> to vector<16x8xf32>
      %75 = vector.shape_cast %74 : vector<16x8xf32> to vector<2x8x8xf32>
      "tpu.trace_start"() <{level = 10 : i32, message = "btc,bsc->bts"}> : () -> ()
      %cst_46 = arith.constant dense<0.000000e+00> : vector<2x8x8xf32>
      %76 = tpu.matmul %71, %73, %cst_46 {dimension_numbers = #tpu.dot_dimension_numbers<[2], [2], [1], [1], [0, 0, 0, 1, 1, 1], [0], [0]>} : vector<2x8x8xf32>, vector<2x8x8xf32>, vector<2x8x8xf32> -> vector<2x8x8xf32>
      "tpu.trace_stop"() : () -> ()
      %cst_47 = arith.constant dense<0xFF800000> : vector<2x8xf32>
      %77 = vector.multi_reduction <maximumf>, %76, %cst_47 [2] : vector<2x8x8xf32> to vector<2x8xf32>
      %78 = vector.shape_cast %77 : vector<2x8xf32> to vector<2x8x1xf32>
      %79 = vector.broadcast %78 : vector<2x8x1xf32> to vector<2x8x8xf32>
      %80 = arith.subf %76, %79 : vector<2x8x8xf32>
      %81 = math.exp %80 : vector<2x8x8xf32>
      %cst_48 = arith.constant dense<0.000000e+00> : vector<2x8xf32>
      %82 = vector.multi_reduction <add>, %81, %cst_48 [2] : vector<2x8x8xf32> to vector<2x8xf32>
      %83 = vector.shape_cast %82 : vector<2x8xf32> to vector<2x8x1xf32>
      %84 = tpu.reciprocal %83 : vector<2x8x1xf32> -> vector<2x8x1xf32>
      %85 = vector.broadcast %84 : vector<2x8x1xf32> to vector<2x8x8xf32>
      %86 = arith.mulf %81, %85 : vector<2x8x8xf32>
      "tpu.trace_start"() <{level = 10 : i32, message = "bts,bsc->btc"}> : () -> ()
      %cst_49 = arith.constant dense<0.000000e+00> : vector<2x8x8xf32>
      %87 = tpu.matmul %86, %75, %cst_49 {dimension_numbers = #tpu.dot_dimension_numbers<[2], [1], [1], [2], [0, 0, 0, 1, 1, 2], [0], [0]>} : vector<2x8x8xf32>, vector<2x8x8xf32>, vector<2x8x8xf32> -> vector<2x8x8xf32>
      "tpu.trace_stop"() : () -> ()
      %c0_50 = arith.constant 0 : index
      %c0_51 = arith.constant 0 : index
      %c0_52 = arith.constant 0 : index
      %88 = vector.load %arg17[%c0_50, %c0_51, %c0_52] : memref<2x8x32xf32, #tpu.memory_space<vmem>>, vector<2x8x8xf32>
      tpu.vector_store %arg17[%c0_50, %c0_51, %c0_52], %87 {strides = array<i32>} : memref<2x8x32xf32, #tpu.memory_space<vmem>>, vector<2x8x8xf32>,
      %89 = vector.extract_strided_slice %67 {offsets = [0, 8], sizes = [16, 8], strides = [1, 1]} : vector<16x96xf32> to vector<16x8xf32>
      %cst_53 = arith.constant 0.353553385 : f32
      %90 = vector.broadcast %cst_53 : f32 to vector<16x8xf32>
      %91 = arith.mulf %89, %90 : vector<16x8xf32>
      %92 = vector.shape_cast %91 : vector<16x8xf32> to vector<2x8x8xf32>
      %93 = vector.extract_strided_slice %67 {offsets = [0, 40], sizes = [16, 8], strides = [1, 1]} : vector<16x96xf32> to vector<16x8xf32>
      %94 = vector.shape_cast %93 : vector<16x8xf32> to vector<2x8x8xf32>
      %95 = vector.extract_strided_slice %67 {offsets = [0, 72], sizes = [16, 8], strides = [1, 1]} : vector<16x96xf32> to vector<16x8xf32>
      %96 = vector.shape_cast %95 : vector<16x8xf32> to vector<2x8x8xf32>
      "tpu.trace_start"() <{level = 10 : i32, message = "btc,bsc->bts"}> : () -> ()
      %cst_54 = arith.constant dense<0.000000e+00> : vector<2x8x8xf32>
      %97 = tpu.matmul %92, %94, %cst_54 {dimension_numbers = #tpu.dot_dimension_numbers<[2], [2], [1], [1], [0, 0, 0, 1, 1, 1], [0], [0]>} : vector<2x8x8xf32>, vector<2x8x8xf32>, vector<2x8x8xf32> -> vector<2x8x8xf32>
      "tpu.trace_stop"() : () -> ()
      %cst_55 = arith.constant dense<0xFF800000> : vector<2x8xf32>
      %98 = vector.multi_reduction <maximumf>, %97, %cst_55 [2] : vector<2x8x8xf32> to vector<2x8xf32>
      %99 = vector.shape_cast %98 : vector<2x8xf32> to vector<2x8x1xf32>
      %100 = vector.broadcast %99 : vector<2x8x1xf32> to vector<2x8x8xf32>
      %101 = arith.subf %97, %100 : vector<2x8x8xf32>
      %102 = math.exp %101 : vector<2x8x8xf32>
      %cst_56 = arith.constant dense<0.000000e+00> : vector<2x8xf32>
      %103 = vector.multi_reduction <add>, %102, %cst_56 [2] : vector<2x8x8xf32> to vector<2x8xf32>
      %104 = vector.shape_cast %103 : vector<2x8xf32> to vector<2x8x1xf32>
      %105 = tpu.reciprocal %104 : vector<2x8x1xf32> -> vector<2x8x1xf32>
      %106 = vector.broadcast %105 : vector<2x8x1xf32> to vector<2x8x8xf32>
      %107 = arith.mulf %102, %106 : vector<2x8x8xf32>
      "tpu.trace_start"() <{level = 10 : i32, message = "bts,bsc->btc"}> : () -> ()
      %cst_57 = arith.constant dense<0.000000e+00> : vector<2x8x8xf32>
      %108 = tpu.matmul %107, %96, %cst_57 {dimension_numbers = #tpu.dot_dimension_numbers<[2], [1], [1], [2], [0, 0, 0, 1, 1, 2], [0], [0]>} : vector<2x8x8xf32>, vector<2x8x8xf32>, vector<2x8x8xf32> -> vector<2x8x8xf32>
      "tpu.trace_stop"() : () -> ()
      %c0_58 = arith.constant 0 : index
      %c0_59 = arith.constant 0 : index
      %c8 = arith.constant 8 : index
      %109 = vector.load %arg17[%c0_58, %c0_59, %c8] : memref<2x8x32xf32, #tpu.memory_space<vmem>>, vector<2x8x8xf32>
      tpu.vector_store %arg17[%c0_58, %c0_59, %c8], %108 {strides = array<i32>} : memref<2x8x32xf32, #tpu.memory_space<vmem>>, vector<2x8x8xf32>,
      %110 = vector.extract_strided_slice %67 {offsets = [0, 16], sizes = [16, 8], strides = [1, 1]} : vector<16x96xf32> to vector<16x8xf32>
      %cst_60 = arith.constant 0.353553385 : f32
      %111 = vector.broadcast %cst_60 : f32 to vector<16x8xf32>
      %112 = arith.mulf %110, %111 : vector<16x8xf32>
      %113 = vector.shape_cast %112 : vector<16x8xf32> to vector<2x8x8xf32>
      %114 = vector.extract_strided_slice %67 {offsets = [0, 48], sizes = [16, 8], strides = [1, 1]} : vector<16x96xf32> to vector<16x8xf32>
      %115 = vector.shape_cast %114 : vector<16x8xf32> to vector<2x8x8xf32>
      %116 = vector.extract_strided_slice %67 {offsets = [0, 80], sizes = [16, 8], strides = [1, 1]} : vector<16x96xf32> to vector<16x8xf32>
      %117 = vector.shape_cast %116 : vector<16x8xf32> to vector<2x8x8xf32>
      "tpu.trace_start"() <{level = 10 : i32, message = "btc,bsc->bts"}> : () -> ()
      %cst_61 = arith.constant dense<0.000000e+00> : vector<2x8x8xf32>
      %118 = tpu.matmul %113, %115, %cst_61 {dimension_numbers = #tpu.dot_dimension_numbers<[2], [2], [1], [1], [0, 0, 0, 1, 1, 1], [0], [0]>} : vector<2x8x8xf32>, vector<2x8x8xf32>, vector<2x8x8xf32> -> vector<2x8x8xf32>
      "tpu.trace_stop"() : () -> ()
      %cst_62 = arith.constant dense<0xFF800000> : vector<2x8xf32>
      %119 = vector.multi_reduction <maximumf>, %118, %cst_62 [2] : vector<2x8x8xf32> to vector<2x8xf32>
      %120 = vector.shape_cast %119 : vector<2x8xf32> to vector<2x8x1xf32>
      %121 = vector.broadcast %120 : vector<2x8x1xf32> to vector<2x8x8xf32>
      %122 = arith.subf %118, %121 : vector<2x8x8xf32>
      %123 = math.exp %122 : vector<2x8x8xf32>
      %cst_63 = arith.constant dense<0.000000e+00> : vector<2x8xf32>
      %124 = vector.multi_reduction <add>, %123, %cst_63 [2] : vector<2x8x8xf32> to vector<2x8xf32>
      %125 = vector.shape_cast %124 : vector<2x8xf32> to vector<2x8x1xf32>
      %126 = tpu.reciprocal %125 : vector<2x8x1xf32> -> vector<2x8x1xf32>
      %127 = vector.broadcast %126 : vector<2x8x1xf32> to vector<2x8x8xf32>
      %128 = arith.mulf %123, %127 : vector<2x8x8xf32>
      "tpu.trace_start"() <{level = 10 : i32, message = "bts,bsc->btc"}> : () -> ()
      %cst_64 = arith.constant dense<0.000000e+00> : vector<2x8x8xf32>
      %129 = tpu.matmul %128, %117, %cst_64 {dimension_numbers = #tpu.dot_dimension_numbers<[2], [1], [1], [2], [0, 0, 0, 1, 1, 2], [0], [0]>} : vector<2x8x8xf32>, vector<2x8x8xf32>, vector<2x8x8xf32> -> vector<2x8x8xf32>
      "tpu.trace_stop"() : () -> ()
      %c0_65 = arith.constant 0 : index
      %c0_66 = arith.constant 0 : index
      %c16 = arith.constant 16 : index
      %130 = vector.load %arg17[%c0_65, %c0_66, %c16] : memref<2x8x32xf32, #tpu.memory_space<vmem>>, vector<2x8x8xf32>
      tpu.vector_store %arg17[%c0_65, %c0_66, %c16], %129 {strides = array<i32>} : memref<2x8x32xf32, #tpu.memory_space<vmem>>, vector<2x8x8xf32>,
      %131 = vector.extract_strided_slice %67 {offsets = [0, 24], sizes = [16, 8], strides = [1, 1]} : vector<16x96xf32> to vector<16x8xf32>
      %cst_67 = arith.constant 0.353553385 : f32
      %132 = vector.broadcast %cst_67 : f32 to vector<16x8xf32>
      %133 = arith.mulf %131, %132 : vector<16x8xf32>
      %134 = vector.shape_cast %133 : vector<16x8xf32> to vector<2x8x8xf32>
      %135 = vector.extract_strided_slice %67 {offsets = [0, 56], sizes = [16, 8], strides = [1, 1]} : vector<16x96xf32> to vector<16x8xf32>
      %136 = vector.shape_cast %135 : vector<16x8xf32> to vector<2x8x8xf32>
      %137 = vector.extract_strided_slice %67 {offsets = [0, 88], sizes = [16, 8], strides = [1, 1]} : vector<16x96xf32> to vector<16x8xf32>
      %138 = vector.shape_cast %137 : vector<16x8xf32> to vector<2x8x8xf32>
      "tpu.trace_start"() <{level = 10 : i32, message = "btc,bsc->bts"}> : () -> ()
      %cst_68 = arith.constant dense<0.000000e+00> : vector<2x8x8xf32>
      %139 = tpu.matmul %134, %136, %cst_68 {dimension_numbers = #tpu.dot_dimension_numbers<[2], [2], [1], [1], [0, 0, 0, 1, 1, 1], [0], [0]>} : vector<2x8x8xf32>, vector<2x8x8xf32>, vector<2x8x8xf32> -> vector<2x8x8xf32>
      "tpu.trace_stop"() : () -> ()
      %cst_69 = arith.constant dense<0xFF800000> : vector<2x8xf32>
      %140 = vector.multi_reduction <maximumf>, %139, %cst_69 [2] : vector<2x8x8xf32> to vector<2x8xf32>
      %141 = vector.shape_cast %140 : vector<2x8xf32> to vector<2x8x1xf32>
      %142 = vector.broadcast %141 : vector<2x8x1xf32> to vector<2x8x8xf32>
      %143 = arith.subf %139, %142 : vector<2x8x8xf32>
      %144 = math.exp %143 : vector<2x8x8xf32>
      %cst_70 = arith.constant dense<0.000000e+00> : vector<2x8xf32>
      %145 = vector.multi_reduction <add>, %144, %cst_70 [2] : vector<2x8x8xf32> to vector<2x8xf32>
      %146 = vector.shape_cast %145 : vector<2x8xf32> to vector<2x8x1xf32>
      %147 = tpu.reciprocal %146 : vector<2x8x1xf32> -> vector<2x8x1xf32>
      %148 = vector.broadcast %147 : vector<2x8x1xf32> to vector<2x8x8xf32>
      %149 = arith.mulf %144, %148 : vector<2x8x8xf32>
      "tpu.trace_start"() <{level = 10 : i32, message = "bts,bsc->btc"}> : () -> ()
      %cst_71 = arith.constant dense<0.000000e+00> : vector<2x8x8xf32>
      %150 = tpu.matmul %149, %138, %cst_71 {dimension_numbers = #tpu.dot_dimension_numbers<[2], [1], [1], [2], [0, 0, 0, 1, 1, 2], [0], [0]>} : vector<2x8x8xf32>, vector<2x8x8xf32>, vector<2x8x8xf32> -> vector<2x8x8xf32>
      "tpu.trace_stop"() : () -> ()
      %c0_72 = arith.constant 0 : index
      %c0_73 = arith.constant 0 : index
      %c24 = arith.constant 24 : index
      %151 = vector.load %arg17[%c0_72, %c0_73, %c24] : memref<2x8x32xf32, #tpu.memory_space<vmem>>, vector<2x8x8xf32>
      tpu.vector_store %arg17[%c0_72, %c0_73, %c24], %150 {strides = array<i32>} : memref<2x8x32xf32, #tpu.memory_space<vmem>>, vector<2x8x8xf32>,
      %c0_74 = arith.constant 0 : index
      %c0_75 = arith.constant 0 : index
      %c0_76 = arith.constant 0 : index
      %152 = vector.load %arg17[%c0_74, %c0_75, %c0_76] : memref<2x8x32xf32, #tpu.memory_space<vmem>>, vector<2x8x32xf32>
      %153 = vector.shape_cast %152 : vector<2x8x32xf32> to vector<16x32xf32>
      %c0_77 = arith.constant 0 : index
      %c0_78 = arith.constant 0 : index
      %c0_79 = arith.constant 0 : index
      %154 = vector.load %arg6[%c0_77, %c0_78, %c0_79] : memref<1x32x32xf32, #tpu.memory_space<vmem>>, vector<1x32x32xf32>
      %155 = vector.shape_cast %154 : vector<1x32x32xf32> to vector<32x32xf32>
      %cst_80 = arith.constant dense<0.000000e+00> : vector<16x32xf32>
      %156 = tpu.matmul %153, %155, %cst_80 {dimension_numbers = #tpu.dot_dimension_numbers<[1], [0], [0], [1], [0, 0, 1, 1], [], []>} : vector<16x32xf32>, vector<32x32xf32>, vector<16x32xf32> -> vector<16x32xf32>
      %157 = arith.addf %34, %156 : vector<16x32xf32>
      %c0_81 = arith.constant 0 : index
      %c0_82 = arith.constant 0 : index
      %c0_83 = arith.constant 0 : index
      %158 = vector.load %arg7[%c0_81, %c0_82, %c0_83] : memref<1x1x32xf32, #tpu.memory_space<vmem>>, vector<1x1x32xf32>
      %159 = vector.shape_cast %158 : vector<1x1x32xf32> to vector<1x32xf32>
      %160 = vector.broadcast %159 : vector<1x32xf32> to vector<16x32xf32>
      %161 = arith.addf %157, %160 : vector<16x32xf32>
      %c0_84 = arith.constant 0 : index
      %c0_85 = arith.constant 0 : index
      %c0_86 = arith.constant 0 : index
      %162 = vector.load %arg15[%c0_84, %c0_85, %c0_86] : memref<1x1x32xf32, #tpu.memory_space<vmem>>, vector<1x1x32xf32>
      %163 = vector.shape_cast %162 : vector<1x1x32xf32> to vector<1x32xf32>
      %164 = vector.broadcast %163 : vector<1x32xf32> to vector<16x32xf32>
      %165 = arith.addf %161, %164 : vector<16x32xf32>
      %c0_87 = arith.constant 0 : index
      %c0_88 = arith.constant 0 : index
      %166 = vector.load %arg19[%c0_87, %c0_88] : memref<16x32xf32, #tpu.memory_space<vmem>>, vector<16x32xf32>
      tpu.vector_store %arg19[%c0_87, %c0_88], %165 {strides = array<i32>} : memref<16x32xf32, #tpu.memory_space<vmem>>, vector<16x32xf32>,
      %c0_89 = arith.constant 0 : index
      %c0_90 = arith.constant 0 : index
      %c0_91 = arith.constant 0 : index
      %167 = vector.load %arg10[%c0_89, %c0_90, %c0_91] : memref<1x1x32xf32, #tpu.memory_space<vmem>>, vector<1x1x32xf32>
      %168 = vector.shape_cast %167 : vector<1x1x32xf32> to vector<1x32xf32>
      %c0_92 = arith.constant 0 : index
      %c0_93 = arith.constant 0 : index
      %c0_94 = arith.constant 0 : index
      %169 = vector.load %arg11[%c0_92, %c0_93, %c0_94] : memref<1x1x32xf32, #tpu.memory_space<vmem>>, vector<1x1x32xf32>
      %170 = vector.shape_cast %169 : vector<1x1x32xf32> to vector<1x32xf32>
      %cst_95 = arith.constant dense<0.000000e+00> : vector<16xf32>
      %171 = vector.multi_reduction <add>, %161, %cst_95 [1] : vector<16x32xf32> to vector<16xf32>
      %172 = vector.shape_cast %171 : vector<16xf32> to vector<16x1xf32>
      %cst_96 = arith.constant 3.200000e+01 : f32
      %173 = vector.broadcast %cst_96 : f32 to vector<16x1xf32>
      %174 = arith.divf %172, %173 : vector<16x1xf32>
      %175 = vector.broadcast %174 : vector<16x1xf32> to vector<16x32xf32>
      %176 = arith.subf %161, %175 : vector<16x32xf32>
      %177 = arith.mulf %176, %176 : vector<16x32xf32>
      %cst_97 = arith.constant dense<0.000000e+00> : vector<16xf32>
      %178 = vector.multi_reduction <add>, %177, %cst_97 [1] : vector<16x32xf32> to vector<16xf32>
      %179 = vector.shape_cast %178 : vector<16xf32> to vector<16x1xf32>
      %cst_98 = arith.constant 3.200000e+01 : f32
      %180 = vector.broadcast %cst_98 : f32 to vector<16x1xf32>
      %181 = arith.divf %179, %180 : vector<16x1xf32>
      %182 = vector.broadcast %174 : vector<16x1xf32> to vector<16x32xf32>
      %183 = arith.subf %161, %182 : vector<16x32xf32>
      %cst_99 = arith.constant 9.99999974E-6 : f32
      %184 = vector.broadcast %cst_99 : f32 to vector<16x1xf32>
      %185 = arith.addf %181, %184 : vector<16x1xf32>
      %186 = math.rsqrt %185 : vector<16x1xf32>
      %187 = vector.broadcast %186 : vector<16x1xf32> to vector<16x32xf32>
      %188 = arith.mulf %183, %187 : vector<16x32xf32>
      %189 = vector.broadcast %168 : vector<1x32xf32> to vector<16x32xf32>
      %190 = arith.mulf %188, %189 : vector<16x32xf32>
      %191 = vector.broadcast %170 : vector<1x32xf32> to vector<16x32xf32>
      %192 = arith.addf %190, %191 : vector<16x32xf32>
      %c0_100 = arith.constant 0 : index
      %c0_101 = arith.constant 0 : index
      %193 = vector.load %arg18[%c0_100, %c0_101] : memref<16x32xf32, #tpu.memory_space<vmem>>, vector<16x32xf32>
      tpu.vector_store %arg18[%c0_100, %c0_101], %192 {strides = array<i32>} : memref<16x32xf32, #tpu.memory_space<vmem>>, vector<16x32xf32>,
    } else {
    }
    %c0 = arith.constant 0 : index
    %c0_4 = arith.constant 0 : index
    %8 = vector.load %arg18[%c0, %c0_4] : memref<16x32xf32, #tpu.memory_space<vmem>>, vector<16x32xf32>
    %c0_5 = arith.constant 0 : index
    %c0_6 = arith.constant 0 : index
    %c0_7 = arith.constant 0 : index
    %9 = vector.load %arg12[%c0_5, %c0_6, %c0_7] : memref<1x32x128xf32, #tpu.memory_space<vmem>>, vector<1x32x128xf32>
    %10 = vector.shape_cast %9 : vector<1x32x128xf32> to vector<32x128xf32>
    %cst = arith.constant dense<0.000000e+00> : vector<16x128xf32>
    %11 = tpu.matmul %8, %10, %cst {dimension_numbers = #tpu.dot_dimension_numbers<[1], [0], [0], [1], [0, 0, 1, 1], [], []>} : vector<16x32xf32>, vector<32x128xf32>, vector<16x128xf32> -> vector<16x128xf32>
    %c0_8 = arith.constant 0 : index
    %c0_9 = arith.constant 0 : index
    %c0_10 = arith.constant 0 : index
    %12 = vector.load %arg13[%c0_8, %c0_9, %c0_10] : memref<1x1x128xf32, #tpu.memory_space<vmem>>, vector<1x1x128xf32>
    %13 = vector.shape_cast %12 : vector<1x1x128xf32> to vector<1x128xf32>
    %14 = vector.broadcast %13 : vector<1x128xf32> to vector<16x128xf32>
    %15 = arith.addf %11, %14 : vector<16x128xf32>
    %cst_11 = arith.constant 5.000000e-01 : f32
    %16 = vector.broadcast %cst_11 : f32 to vector<16x128xf32>
    %17 = arith.mulf %16, %15 : vector<16x128xf32>
    %cst_12 = arith.constant 0.707106769 : f32
    %18 = vector.broadcast %cst_12 : f32 to vector<16x128xf32>
    %19 = arith.mulf %15, %18 : vector<16x128xf32>
    %20 = math.erf %19 : vector<16x128xf32>
    %cst_13 = arith.constant 1.000000e+00 : f32
    %21 = vector.broadcast %cst_13 : f32 to vector<16x128xf32>
    %22 = arith.addf %21, %20 : vector<16x128xf32>
    %23 = arith.mulf %17, %22 : vector<16x128xf32>
    %c0_14 = arith.constant 0 : index
    %c0_15 = arith.constant 0 : index
    %24 = vector.load %arg19[%c0_14, %c0_15] : memref<16x32xf32, #tpu.memory_space<vmem>>, vector<16x32xf32>
    %c0_16 = arith.constant 0 : index
    %c0_17 = arith.constant 0 : index
    %c0_18 = arith.constant 0 : index
    %25 = vector.load %arg14[%c0_16, %c0_17, %c0_18] : memref<1x128x32xf32, #tpu.memory_space<vmem>>, vector<1x128x32xf32>
    %26 = vector.shape_cast %25 : vector<1x128x32xf32> to vector<128x32xf32>
    %cst_19 = arith.constant dense<0.000000e+00> : vector<16x32xf32>
    %27 = tpu.matmul %23, %26, %cst_19 {dimension_numbers = #tpu.dot_dimension_numbers<[1], [0], [0], [1], [0, 0, 1, 1], [], []>} : vector<16x128xf32>, vector<128x32xf32>, vector<16x32xf32> -> vector<16x32xf32>
    %28 = arith.addf %24, %27 : vector<16x32xf32>
    %c0_20 = arith.constant 0 : index
    %c0_21 = arith.constant 0 : index
    %29 = vector.load %arg19[%c0_20, %c0_21] : memref<16x32xf32, #tpu.memory_space<vmem>>, vector<16x32xf32>
    tpu.vector_store %arg19[%c0_20, %c0_21], %28 {strides = array<i32>} : memref<16x32xf32, #tpu.memory_space<vmem>>, vector<16x32xf32>,
    %c0_i32_22 = arith.constant 0 : i32
    %30 = arith.cmpi eq, %arg2, %c0_i32_22 : i32
    %31 = arith.extui %30 : i1 to i32
    %c0_i32_23 = arith.constant 0 : i32
    %32 = arith.cmpi ne, %31, %c0_i32_23 : i32
    scf.if %32 {
      %c0_24 = arith.constant 0 : index
      %c0_25 = arith.constant 0 : index
      %33 = vector.load %arg19[%c0_24, %c0_25] : memref<16x32xf32, #tpu.memory_space<vmem>>, vector<16x32xf32>
      %34 = vector.shape_cast %33 : vector<16x32xf32> to vector<2x8x32xf32>
      %c0_26 = arith.constant 0 : index
      %c0_27 = arith.constant 0 : index
      %c0_28 = arith.constant 0 : index
      %35 = vector.load %arg16[%c0_26, %c0_27, %c0_28] : memref<2x8x32xf32, #tpu.memory_space<vmem>>, vector<2x8x32xf32>
      tpu.vector_store %arg16[%c0_26, %c0_27, %c0_28], %34 {strides = array<i32>} : memref<2x8x32xf32, #tpu.memory_space<vmem>>, vector<2x8x32xf32>,
    } else {
    }
    return
  }
  func.func @transform_0(%arg0: i32, %arg1: i32, %arg2: i32) -> (i32, i32, i32) {
    %c0_i32 = arith.constant 0 : i32
    %c0_i32_0 = arith.constant 0 : i32
    %c0_i32_1 = arith.constant 0 : i32
    return %arg0, %c0_i32, %c0_i32_0 : i32, i32, i32
  }
  func.func @transform_1(%arg0: i32, %arg1: i32, %arg2: i32) -> (i32, i32, i32) {
    %c0_i32 = arith.constant 0 : i32
    %c0_i32_0 = arith.constant 0 : i32
    %c0_i32_1 = arith.constant 0 : i32
    return %arg1, %c0_i32, %c0_i32_0 : i32, i32, i32
  }
  func.func @transform_2(%arg0: i32, %arg1: i32, %arg2: i32) -> (i32, i32, i32) {
    %c0_i32 = arith.constant 0 : i32
    %c0_i32_0 = arith.constant 0 : i32
    %c0_i32_1 = arith.constant 0 : i32
    return %arg1, %c0_i32, %c0_i32_0 : i32, i32, i32
  }
  func.func @transform_3(%arg0: i32, %arg1: i32, %arg2: i32) -> (i32, i32, i32) {
    %c0_i32 = arith.constant 0 : i32
    %c0_i32_0 = arith.constant 0 : i32
    %c0_i32_1 = arith.constant 0 : i32
    return %arg1, %c0_i32, %c0_i32_0 : i32, i32, i32
  }
  func.func @transform_4(%arg0: i32, %arg1: i32, %arg2: i32) -> (i32, i32, i32) {
    %c0_i32 = arith.constant 0 : i32
    %c0_i32_0 = arith.constant 0 : i32
    %c0_i32_1 = arith.constant 0 : i32
    return %arg1, %c0_i32, %c0_i32_0 : i32, i32, i32
  }
  func.func @transform_5(%arg0: i32, %arg1: i32, %arg2: i32) -> (i32, i32, i32) {
    %c0_i32 = arith.constant 0 : i32
    %c0_i32_0 = arith.constant 0 : i32
    %c0_i32_1 = arith.constant 0 : i32
    return %arg1, %c0_i32, %c0_i32_0 : i32, i32, i32
  }
  func.func @transform_6(%arg0: i32, %arg1: i32, %arg2: i32) -> (i32, i32, i32) {
    %c0_i32 = arith.constant 0 : i32
    %c0_i32_0 = arith.constant 0 : i32
    %c0_i32_1 = arith.constant 0 : i32
    return %arg1, %c0_i32, %c0_i32_0 : i32, i32, i32
  }
  func.func @transform_7(%arg0: i32, %arg1: i32, %arg2: i32) -> (i32, i32, i32) {
    %c0_i32 = arith.constant 0 : i32
    %c0_i32_0 = arith.constant 0 : i32
    %c0_i32_1 = arith.constant 0 : i32
    return %arg1, %c0_i32, %c0_i32_0 : i32, i32, i32
  }
  func.func @transform_8(%arg0: i32, %arg1: i32, %arg2: i32) -> (i32, i32, i32) {
    %c0_i32 = arith.constant 0 : i32
    %c0_i32_0 = arith.constant 0 : i32
    %c0_i32_1 = arith.constant 0 : i32
    return %arg1, %c0_i32, %c0_i32_0 : i32, i32, i32
  }
  func.func @transform_9(%arg0: i32, %arg1: i32, %arg2: i32) -> (i32, i32, i32) {
    %c0_i32 = arith.constant 0 : i32
    %c0_i32_0 = arith.constant 0 : i32
    return %arg1, %c0_i32, %arg2 : i32, i32, i32
  }
  func.func @transform_10(%arg0: i32, %arg1: i32, %arg2: i32) -> (i32, i32, i32) {
    %c0_i32 = arith.constant 0 : i32
    %c0_i32_0 = arith.constant 0 : i32
    return %arg1, %c0_i32, %arg2 : i32, i32, i32
  }
  func.func @transform_11(%arg0: i32, %arg1: i32, %arg2: i32) -> (i32, i32, i32) {
    %c0_i32 = arith.constant 0 : i32
    %c0_i32_0 = arith.constant 0 : i32
    return %arg1, %arg2, %c0_i32 : i32, i32, i32
  }
  func.func @transform_12(%arg0: i32, %arg1: i32, %arg2: i32) -> (i32, i32, i32) {
    %c0_i32 = arith.constant 0 : i32
    %c0_i32_0 = arith.constant 0 : i32
    %c0_i32_1 = arith.constant 0 : i32
    return %arg1, %c0_i32, %c0_i32_0 : i32, i32, i32
  }
  func.func @transform_13(%arg0: i32, %arg1: i32, %arg2: i32) -> (i32, i32, i32) {
    %c0_i32 = arith.constant 0 : i32
    %c0_i32_0 = arith.constant 0 : i32
    %c0_i32_1 = arith.constant 0 : i32
    return %arg0, %c0_i32, %c0_i32_0 : i32, i32, i32
  }
}

</mosaic_0001>

<bundles_post_ra>
// kernel: tpu_custom_call.1
= control target key start
LH: loop header
LB: loop body
LE: loop exit
PB: predicated region body
PF: predicated region fallthrough
CT: control target
= control target key end

     0   :  { %s3686_s0 = inlined_call_operand.vmem [shape: f32[2,8,32], index: 0, kind: input, shape index: {}]   ;;  %s3687_s1 = inlined_call_operand.vmem [shape: f32[2,32,96], index: 1, kind: input, shape index: {}]   ;;  %s3688_s2 = inlined_call_operand.vmem [shape: f32[2,1,96], index: 2, kind: input, shape index: {}]   ;;  %s3689_s3 = inlined_call_operand.vmem [shape: f32[2,32,32], index: 3, kind: input, shape index: {}]   ;;  %s3690_s4 = inlined_call_operand.vmem [shape: f32[2,1,32], index: 4, kind: input, shape index: {}]   ;;  %s3691_s5 = inlined_call_operand.vmem [shape: f32[2,1,32], index: 5, kind: input, shape index: {}]   ;;  %s3692_s6 = inlined_call_operand.vmem [shape: f32[2,1,32], index: 6, kind: input, shape index: {}]   ;;  %s3693_s7 = inlined_call_operand.vmem [shape: f32[2,1,32], index: 7, kind: input, shape index: {}]   ;;  %s3694_s8 = inlined_call_operand.vmem [shape: f32[2,1,32], index: 8, kind: input, shape index: {}]   ;;  %s3695_s9 = inlined_call_operand.vmem [shape: f32[2,32,128], index: 9, kind: input, shape index: {}]   ;;  %s3696_s10 = inlined_call_operand.vmem [shape: f32[2,1,128], index: 10, kind: input, shape index: {}]   ;;  %s3697_s11 = inlined_call_operand.vmem [shape: f32[2,128,32], index: 11, kind: input, shape index: {}]   ;;  %s3698_s12 = inlined_call_operand.vmem [shape: f32[2,1,32], index: 12, kind: input, shape index: {}]   ;;  %s3699_s13 = inlined_call_operand.hbm [shape: f32[2,8,32], index: 13, kind: output, shape index: {}]  }
   0x1   :  { %3704 = sst [smem:[#allocation12_spill]] %s3687_s1 }
   0x2   :  { %3705 = sst [smem:[#allocation13_spill]] %s3688_s2 }
   0x3   :  { %3706 = sst [smem:[#allocation14_spill]] %s3689_s3 }
   0x4   :  { %3707 = sst [smem:[#allocation15_spill]] %s3699_s13 }
   0x5   :  { %18 = vsyncpa [#allocation6], 0  ;;  %s3330_s25 = smov 0   ;;  %s3332_s26 = smov 0  }
   0x6   :  { %s3334_s27 = smov 0  }
   0x7 LB: > { %3708 = sst [smem:[#allocation8_spill]] %s3236_s26  ;;  %s39_s29 = sadd.s32 1, %s3236_s26  ;;  %s3240_s27 = sphi %s3334_s27, %s24_s27   ;;  %s3236_s26 = sphi %s3332_s26, %s3726_s26   ;;  %s3232_s25 = sphi %s3330_s25, %s3725_s25  }
   0x8   : > { %3709 = sst [smem:[#allocation9_spill]] %s3240_s27  ;;  %p41_p0 = scmp.ge.s32.totalorder %s39_s29, 2 }
   0x9   : > { %p2767_p1 = scmp.ge.s32.totalorder %s3240_s27, 1  ;;  %p529_p2 = scmp.lt.s32.totalorder %s3240_s27, 3 }
   0xa   : > { %s3728_s29 = smov (%p41_p0, %s39_s29), 0 }
   0xb   : > { %3710 = sst [smem:[#allocation10_spill]] %s3728_s29  ;;  %p530_p3 = pnand %p2767_p1, %p529_p2 }
   0xd   : > { %533 = sbr.rel (%p530_p3) target bundleno = 4156 (0x103c), region = 72 }
  0x14   : > { %p628_p4 = scmp.lt.s32.totalorder %s3232_s25, 1  ;;  %p684_p5 = scmp.eq.s32.totalorder %s3232_s25, 0 }
  0x15   : > { %s3712_s1 = sld [smem:[#allocation12_spill]]  ;;  %s3713_s3 = sld [smem:[#allocation14_spill]]  ;;  %v690_v0 = vld [vmem:[%s3686_s0] sm:$0xff] (%p684_p5)  ;;  %vm692_vm0 = vcmask (%p684_p5), 261120   ;;  %v691_v1 = vld [vmem:[%s3686_s0 + $0x8] sm:$0xff] (%p684_p5) }
  0x16   : > { %s3349_s30 = scalar_select %p628_p4, %s3232_s25, 1 }
  0x17   : > { %689 = sbr.rel (!%p684_p5) target bundleno = 30 (0x1e), region = 76  ;;  %693 = vst.msk [vmem:[#allocation5] sm:$0xff] (%p684_p5), %vm692_vm0, %v690_v0  ;;  %694 = vst.msk [vmem:[#allocation5 + $0x8] sm:$0xff] (%p684_p5), %vm692_vm0, %v691_v1 }
  0x18   : > { %s2819_s14 = sshll.u32 %s3349_s30, 5  ;;  %s646_s27 = scalar_lea.vmem %s3691_s5, %s3349_s30 }
  0x19   : > { %s655_s22 = scalar_lea.vmem %s3694_s8, %s3349_s30  ;;  %s3389_s28 = scalar_lea.vmem %s3695_s9, %s2819_s14 }
  0x1a   : > { %s669_s26 = scalar_lea.vmem %s3696_s10, %s3349_s30  ;;  %s2822_s29 = sshll.u32 %s3349_s30, 7 }
  0x1b   : > { %s3359_s20 = scalar_lea.vmem %s3712_s1, %s2819_s14  ;;  %s3364_s23 = scalar_lea.vmem %s3713_s3, %s2819_s14 }
  0x1c   : > { %3714 = sst [smem:[#allocation11_spill]] %s3364_s23  ;;  %s652_s1 = scalar_lea.vmem %s3693_s7, %s3349_s30 }
  0x1d   : > { %s3399_s17 = scalar_lea.vmem %s3697_s11, %s2822_s29  ;;  %s682_s2 = scalar_lea.vmem %s3698_s12, %s3349_s30 }
  0x1e PF: > { %v3412_v2 = vld [vmem:[#allocation5] sm:$0xff]  ;;  %vm702_vm1 = vcmask 261120   ;;  %v3414_v3 = vld [vmem:[#allocation5 + $0x8] sm:$0xff]  ;;  %v746_v16 = vld [vmem:[%s3359_s20] sm:$0xff]  ;;  %s3715_s13 = scalar_lea.vmem %s3692_s6, %s3349_s30  ;;  %v3242_v38 = vmov 0.0   ;;  %vm3243_vm2 = vmmov 0  }
  0x1f   : > { %v703_v4 = vsel %vm702_vm1, %v3412_v2, 0.0  ;;  %v706_v5 = vsel %vm702_vm1, %v3414_v3, 0.0  ;;  %v747_v17 = vld [vmem:[%s3359_s20 + $0x8] sm:$0xff]  ;;  %v748_v18 = vld [vmem:[%s3359_s20 + $0x10] sm:$0xff]  ;;  %v749_v20 = vld [vmem:[%s3359_s20 + $0x18] sm:$0xff]  ;;  %2913 = vmatprep.subr.mxu0 %v3242_v38  ;;  %2915 = vmatprep.mubr.msk.f32.mxu0 %vm3243_vm2, %v3242_v38  ;;  %s3716_s16 = sld [smem:[#allocation13_spill]] }
  0x20   : > { %704 = vadd.xlane.f32.xlu0 %v703_v4  ;;  %v3040_v19 = vpack.c.bf16 %v747_v17, %v746_v16  ;;  %v3044_v21 = vpack.c.bf16 %v749_v20, %v748_v18  ;;  %v2777_v29 = vld [vmem:[%s646_s27] ss:$0 sm:$0xff]  ;;  %s3244_s19 = smov 96   ;;  %vm843_vm3 = vcmask 64512   ;;  %s3245_s21 = smov 64   ;;  %vm1511_vm4 = vcmask 130112  }
  0x21   : > { %v2778_v31 = vld [vmem:[%s3715_s13] ss:$0 sm:$0xff]  ;;  %s3246_s3 = smov 88   ;;  %s3247_s14 = smov 120   ;;  %vm1852_vm5 = vcmask 195712   ;;  %vm2193_vm6 = vcmask 261312  }
  0x22   : > { %3041 = vmatprep.subr.bf16.mxu1 %v3040_v19  ;;  %s3248_s23 = smov 56   ;;  %s3249_s25 = smov 80  }
  0x23   : > { %3043 = vmatpush3.bf16.msra.mxu1 %v3040_v19  ;;  %s3250_s29 = smov 112   ;;  %s3251_s20 = smov 48  }
  0x24   : > { %707 = vadd.xlane.f32.xlu0 %v706_v5  ;;  %3045 = vmatprep.subr.bf16.mxu1 %v3044_v21  ;;  %s3252_s24 = smov 72   ;;  %s3253_s13 = smov 104  }
  0x25   : > { %s3717_s18 = scalar_lea.vmem %s3716_s16, %s3349_s30  ;;  %s3254_s27 = smov 40  }
  0x26   : > { %v2779_v39 = vld [vmem:[%s3717_s18] ss:$0 sm:$0xff]  ;;  %s3255_s15 = smov 8   ;;  %s3256_s16 = smov 16  }
  0x27   : > { %3047 = vmatpush3.bf16.msra.mxu1 %v3044_v21  ;;  %s3718_s18 = sld [smem:[#allocation11_spill]] }
  0x28   : > { %2903 = vmatprep.subr.mxu1 %v3242_v38 }
  0xad   : > { %v705_v6 = vpop.xlane.xlu0 %704 }
  0xae   : > { %v710_v7 = vmul.f32 0.03125, %v705_v6 }
  0xb0   : > { %v712_v8 = vsub.f32 %v3412_v2, %v710_v7 }
  0xb1   : > { %v708_v9 = vpop.xlane.xlu0 %707 }
  0xb2   : > { %v711_v10 = vmul.f32 0.03125, %v708_v9  ;;  %v714_v11 = vmul.f32 %v712_v8, %v712_v8 }
  0xb4   : > { %v713_v12 = vsub.f32 %v3414_v3, %v711_v10  ;;  %v716_v13 = vsel %vm702_vm1, %v714_v11, 0.0 }
  0xb5   : > { %717 = vadd.xlane.f32.xlu1 %v716_v13 }
  0xb6   : > { %v715_v14 = vmul.f32 %v713_v12, %v713_v12 }
  0xb8   : > { %v719_v15 = vsel %vm702_vm1, %v715_v14, 0.0 }
  0xb9   : > { %720 = vadd.xlane.f32.xlu1 %v719_v15 }
 0x142   : > { %v718_v22 = vpop.xlane.xlu1 %717 }
 0x143   : > { %v722_v23 = vmul.f32 0.03125, %v718_v22 }
 0x145   : > { %v724_v24 = vadd.f32 1e-05, %v722_v23 }
 0x146   : > { %v721_v25 = vpop.xlane.xlu1 %720 }
 0x147   : > { %3144 = vrsqrt.f32 %v724_v24  ;;  %v723_v26 = vmul.f32 0.03125, %v721_v25 }
 0x149   : > { %v725_v27 = vadd.f32 1e-05, %v723_v26 }
 0x14b   : > { %3146 = vrsqrt.f32 %v725_v27 }
 0x151   : > { %v3145_v28 = vpop.eup %3144 }
 0x152   : > { %v728_v30 = vmul.f32 %v3145_v28, %v712_v8 }
 0x154   : > { %v736_v32 = vmul.f32 %v2777_v29, %v728_v30 }
 0x155   : > { %v3147_v33 = vpop.eup %3146 }
 0x156   : > { %v729_v34 = vmul.f32 %v3147_v33, %v713_v12  ;;  %v744_v35 = vadd.f32 %v2778_v31, %v736_v32 }
 0x158   : > { %v737_v36 = vmul.f32 %v2777_v29, %v729_v34  ;;  %2900 = vmatprep.mubr.msk.f32.mxu1 %vm702_vm1, %v744_v35 }
 0x15a   : > { %v745_v37 = vadd.f32 %v2778_v31, %v737_v36 }
 0x15c   : > { %2901 = vmatmul.mubr.msk.f32.vlgmr.msra.gmra.mrb[0].mxu1 %vm702_vm1, %v745_v37 }
 0x15d   : > { %2905 = vmatprep.mubr.msk.f32.mxu1 %vm3243_vm2, %v3242_v38 }
 0x22f   : > { %v2902_v40 = vpop.f32.mrb[0].mxu1 }
 0x230   : > { %v3451_v41 = vadd.f32 %v2902_v40, %v2779_v39  ;;  %v829_v42 = vpop.f32.mrb[1].mxu1 }
 0x231   : > { %v3453_v43 = vadd.f32 %v2779_v39, %v829_v42 }
 0x232   : > { %920 = vrot.lane.b32.xlu1 %v3451_v41, %s3244_s19  ;;  %v3468_v47 = vmul.f32 0.35355338, %v3451_v41 }
 0x233   : > { %841 = vrot.lane.b32.xlu0 %v3453_v43, %s3244_s19  ;;  %v3459_v45 = vmul.f32 0.35355338, %v3453_v43  ;;  %s3257_s19 = smov 24  }
 0x2a4   : > { %v921_v46 = vpop.permute.xlu1 %920 }
 0x2a5   : > { %v842_v44 = vpop.permute.xlu0 %841 }
 0x2a6   : > { %2904 = vmatpush3.xpose.msk.msra.mxu1 %vm843_vm3, %v842_v44 }
 0x2a7   : > { %2908 = vmatprep.subr.mxu1 %v3242_v38 }
 0x2a9   : > { %2906 = vmatmul.mubr.msk.f32.vlgmr.msra.gmra.mrb[2].mxu1 %vm843_vm3, %v3459_v45 }
 0x2aa   : > { %2909 = vmatpush3.xpose.msk.msra.mxu1 %vm843_vm3, %v921_v46  ;;  %2910 = vmatprep.mubr.msk.f32.mxu1 %vm3243_vm2, %v3242_v38 }
 0x2ab   : > { %2918 = vmatprep.subr.mxu1 %v3242_v38 }
 0x2ad   : > { %2911 = vmatmul.mubr.msk.f32.vlgmr.msra.gmra.mrb[4].mxu1 %vm843_vm3, %v3468_v47 }
 0x2ae   : > { %2920 = vmatprep.mubr.msk.f32.mxu1 %vm3243_vm2, %v3242_v38 }
 0x37c   : > { %v915_v48 = vpop.f32.mrb[2].mxu1 }
 0x37d   : > { %v2907_v49 = vpop.f32.mrb[3].mxu1  ;;  %v997_v50 = vsel %vm843_vm3, %v915_v48, -inf }
 0x37e   : > { %998 = vmax.xlane.f32.xlu1 %v997_v50 }
 0x380   : > { %v993_v51 = vpop.f32.mrb[4].mxu1 }
 0x381   : > { %v2912_v52 = vpop.f32.mrb[5].mxu1  ;;  %v1000_v53 = vsel %vm843_vm3, %v993_v51, -inf }
 0x382   : > { %1001 = vmax.xlane.f32.xlu0 %v1000_v53 }
 0x38f   : > { %1095 = vrot.lane.b32.xlu1 %v3451_v41, %s3245_s21 }
 0x393   : > { %1175 = vrot.lane.b32.xlu1 %v3453_v43, %s3246_s3 }
 0x397   : > { %1253 = vrot.lane.b32.xlu1 %v3451_v41, %s3246_s3 }
 0x398   : > { %1019 = vrot.lane.b32.xlu0 %v3453_v43, %s3245_s21 }
 0x40b   : > { %v999_v54 = vpop.xlane.xlu1 %998 }
 0x40c   : > { %v1003_v55 = vsub.f32 %v915_v48, %v999_v54 }
 0x40e   : > { %v1005_v56 = vmul.f32 1.442695, %v1003_v55 }
 0x40f   : > { %v1096_v57 = vpop.permute.xlu1 %1095  ;;  %v1002_v58 = vpop.xlane.xlu0 %1001 }
 0x410   : > { %3148 = vpow2.f32 %v1005_v56  ;;  %v1004_v59 = vsub.f32 %v993_v51, %v1002_v58  ;;  %2919 = vmatpush3.msra.mxu1 %v1096_v57 }
 0x411   : > { %2928 = vmatprep.subr.mxu1 %v3242_v38 }
 0x412   : > { %v1007_v60 = vmul.f32 1.442695, %v1004_v59 }
 0x413   : > { %v1020_v61 = vpop.permute.xlu0 %1019  ;;  %v1176_v4 = vpop.permute.xlu1 %1175 }
 0x414   : > { %3150 = vpow2.f32 %v1007_v60  ;;  %2914 = vmatpush3.msra.mxu0 %v1020_v61 }
 0x415   : > { %2923 = vmatprep.subr.mxu0 %v3242_v38 }
 0x417   : > { %v1254_v5 = vpop.permute.xlu1 %1253 }
 0x41a   : > { %v3149_v62 = vpop.eup %3148 }
 0x41b   : > { %v1009_v63 = vsel %vm843_vm3, %v3149_v62, 0.0 }
 0x41c   : > { %1010 = vadd.xlane.f32.xlu0 %v1009_v63 }
 0x41e   : > { %v3151_v0 = vpop.eup %3150 }
 0x41f   : > { %v1012_v1 = vsel %vm843_vm3, %v3151_v0, 0.0 }
 0x420   : > { %1013 = vadd.xlane.f32.xlu1 %v1012_v1 }
 0x431   : > { %1251 = vrot.lane.b32.xlu1 %v3468_v47, %s3247_s14 }
 0x432   : > { %1173 = vrot.lane.b32.xlu0 %v3459_v45, %s3247_s14  ;;  %s3719_s14 = scalar_lea.vmem %s3690_s4, %s3349_s30  ;;  %s3258_s30 = smov [#allocation5]  }
 0x4a9   : > { %v1011_v6 = vpop.xlane.xlu0 %1010 }
 0x4aa   : > { %3152 = vrcp.f32 %v1011_v6 }
 0x4ad   : > { %v1014_v7 = vpop.xlane.xlu1 %1013  ;;  %v1174_v12 = vpop.permute.xlu0 %1173 }
 0x4ae   : > { %3154 = vrcp.f32 %v1014_v7 }
 0x4b1   : > { %v1252_v13 = vpop.permute.xlu1 %1251 }
 0x4b4   : > { %v3153_v8 = vpop.eup %3152 }
 0x4b5   : > { %v1017_v9 = vmul.f32 %v3153_v8, %v3149_v62 }
 0x4b7   : > { %2916 = vmatmul.mubr.msk.f32.vlgmr.msra.gmra.mrb[0].mxu0 %vm843_vm3, %v1017_v9 }
 0x4b8   : > { %v3155_v10 = vpop.eup %3154  ;;  %2924 = vmatpush3.xpose.msk.msra.mxu0 %vm843_vm3, %v1176_v4  ;;  %2925 = vmatprep.mubr.msk.f32.mxu0 %vm3243_vm2, %v3242_v38 }
 0x4b9   : > { %v1018_v11 = vmul.f32 %v3155_v10, %v3151_v0  ;;  %2933 = vmatprep.subr.mxu0 %v3242_v38 }
 0x4bb   : > { %2921 = vmatmul.mubr.msk.f32.vlgmr.msra.gmra.mrb[6].mxu1 %vm843_vm3, %v1018_v11  ;;  %2926 = vmatmul.mubr.msk.f32.vlgmr.msra.gmra.mrb[2].mxu0 %vm843_vm3, %v1174_v12 }
 0x4bc   : > { %2929 = vmatpush3.xpose.msk.msra.mxu1 %vm843_vm3, %v1254_v5  ;;  %2930 = vmatprep.mubr.msk.f32.mxu1 %vm3243_vm2, %v3242_v38 }
 0x4bd   : > { %2938 = vmatprep.subr.mxu1 %v3242_v38  ;;  %2935 = vmatprep.mubr.msk.f32.mxu0 %vm3243_vm2, %v3242_v38 }
 0x4bf   : > { %2931 = vmatmul.mubr.msk.f32.vlgmr.msra.gmra.mrb[8].mxu1 %vm843_vm3, %v1252_v13 }
 0x4c0   : > { %2940 = vmatprep.mubr.msk.f32.mxu1 %vm3243_vm2, %v3242_v38 }
 0x58a   : > { %v1091_v14 = vpop.f32.mrb[0].mxu0 }
 0x58b   : > { %1171 = vst.msk [vmem:[#allocation2] sm:$0xff] %vm843_vm3, %v1091_v14  ;;  %v2917_v15 = vpop.f32.mrb[1].mxu0 }
 0x58e   : > { %v1167_v16 = vpop.f32.mrb[6].mxu1  ;;  %v1247_v17 = vpop.f32.mrb[2].mxu0 }
 0x58f   : > { %1172 = vst.msk [vmem:[#allocation2 + $0x8] sm:$0xff] %vm843_vm3, %v1167_v16  ;;  %v2922_v18 = vpop.f32.mrb[7].mxu1  ;;  %v2927_v19 = vpop.f32.mrb[3].mxu0  ;;  %v1329_v20 = vsel %vm843_vm3, %v1247_v17, -inf }
 0x590   : > { %1330 = vmax.xlane.f32.xlu0 %v1329_v20 }
 0x592   : > { %v1325_v21 = vpop.f32.mrb[8].mxu1 }
 0x593   : > { %v2932_v22 = vpop.f32.mrb[9].mxu1  ;;  %v1332_v23 = vsel %vm843_vm3, %v1325_v21, -inf }
 0x594   : > { %1333 = vmax.xlane.f32.xlu1 %v1332_v23 }
 0x5a5   : > { %1427 = vrot.lane.b32.xlu1 %v3451_v41, %s3248_s23 }
 0x5a6   : > { %1351 = vrot.lane.b32.xlu0 %v3453_v43, %s3248_s23 }
 0x5a9   : > { %1516 = vrot.lane.b32.xlu1 %v3453_v43, %s3249_s25 }
 0x5ad   : > { %1594 = vrot.lane.b32.xlu1 %v3451_v41, %s3249_s25 }
 0x5b1   : > { %1592 = vrot.lane.b32.xlu1 %v3468_v47, %s3250_s29 }
 0x61d   : > { %v1331_v24 = vpop.xlane.xlu0 %1330 }
 0x61e   : > { %v1335_v25 = vsub.f32 %v1247_v17, %v1331_v24 }
 0x620   : > { %v1337_v26 = vmul.f32 1.442695, %v1335_v25 }
 0x621   : > { %v1352_v27 = vpop.permute.xlu0 %1351  ;;  %v1334_v28 = vpop.xlane.xlu1 %1333 }
 0x622   : > { %3156 = vpow2.f32 %v1337_v26  ;;  %v1336_v29 = vsub.f32 %v1325_v21, %v1334_v28  ;;  %2934 = vmatpush3.msra.mxu0 %v1352_v27 }
 0x623   : > { %2943 = vmatprep.subr.mxu0 %v3242_v38 }
 0x624   : > { %v1339_v30 = vmul.f32 1.442695, %v1336_v29 }
 0x625   : > { %v1428_v31 = vpop.permute.xlu1 %1427 }
 0x626   : > { %3158 = vpow2.f32 %v1339_v30  ;;  %2939 = vmatpush3.msra.mxu1 %v1428_v31 }
 0x627   : > { %2948 = vmatprep.subr.mxu1 %v3242_v38 }
 0x629   : > { %v1517_v39 = vpop.permute.xlu1 %1516 }
 0x62c   : > { %v3157_v32 = vpop.eup %3156 }
 0x62d   : > { %v1341_v33 = vsel %vm843_vm3, %v3157_v32, 0.0  ;;  %v1595_v46 = vpop.permute.xlu1 %1594 }
 0x62e   : > { %1342 = vadd.xlane.f32.xlu0 %v1341_v33 }
 0x630   : > { %v3159_v34 = vpop.eup %3158 }
 0x631   : > { %v1344_v35 = vsel %vm843_vm3, %v3159_v34, 0.0  ;;  %v1593_v50 = vpop.permute.xlu1 %1592 }
 0x632   : > { %1345 = vadd.xlane.f32.xlu0 %v1344_v35 }
 0x648   : > { %1514 = vrot.lane.b32.xlu0 %v3459_v45, %s3250_s29 }
 0x6bb   : > { %v1343_v36 = vpop.xlane.xlu0 %1342 }
 0x6bc   : > { %3160 = vrcp.f32 %v1343_v36 }
 0x6bf   : > { %v1346_v37 = vpop.xlane.xlu0 %1345 }
 0x6c0   : > { %3162 = vrcp.f32 %v1346_v37 }
 0x6c3   : > { %v1515_v49 = vpop.permute.xlu0 %1514 }
 0x6c6   : > { %v3161_v40 = vpop.eup %3160 }
 0x6c7   : > { %v1349_v42 = vmul.f32 %v3161_v40, %v3157_v32 }
 0x6c9   : > { %2936 = vmatmul.mubr.msk.f32.vlgmr.msra.gmra.mrb[4].mxu0 %vm843_vm3, %v1349_v42 }
 0x6ca   : > { %v3163_v44 = vpop.eup %3162  ;;  %2944 = vmatpush3.xpose.msk.msra.mxu0 %vm843_vm3, %v1517_v39  ;;  %2945 = vmatprep.mubr.msk.f32.mxu0 %vm3243_vm2, %v3242_v38 }
 0x6cb   : > { %v1350_v48 = vmul.f32 %v3163_v44, %v3159_v34  ;;  %2953 = vmatprep.subr.mxu0 %v3242_v38 }
 0x6cd   : > { %2941 = vmatmul.mubr.msk.f32.vlgmr.msra.gmra.mrb[10].mxu1 %vm843_vm3, %v1350_v48  ;;  %2946 = vmatmul.mubr.msk.f32.vlgmr.msra.gmra.mrb[6].mxu0 %vm843_vm3, %v1515_v49 }
 0x6ce   : > { %2949 = vmatpush3.xpose.msk.msra.mxu1 %vm843_vm3, %v1595_v46  ;;  %2950 = vmatprep.mubr.msk.f32.mxu1 %vm3243_vm2, %v3242_v38 }
 0x6cf   : > { %2958 = vmatprep.subr.mxu1 %v3242_v38  ;;  %2955 = vmatprep.mubr.msk.f32.mxu0 %vm3243_vm2, %v3242_v38 }
 0x6d1   : > { %2951 = vmatmul.mubr.msk.f32.vlgmr.msra.gmra.mrb[12].mxu1 %vm843_vm3, %v1593_v50 }
 0x6d2   : > { %2960 = vmatprep.mubr.msk.f32.mxu1 %vm3243_vm2, %v3242_v38 }
 0x79c   : > { %v3533_v51 = vpop.f32.mrb[4].mxu0 }
 0x79d   : > { %v2937_v52 = vpop.f32.mrb[5].mxu0 }
 0x7a0   : > { %v3535_v53 = vpop.f32.mrb[10].mxu1  ;;  %v1588_v54 = vpop.f32.mrb[6].mxu0 }
 0x7a1   : > { %v2942_v55 = vpop.f32.mrb[11].mxu1  ;;  %v2947_v56 = vpop.f32.mrb[7].mxu0  ;;  %v1670_v57 = vsel %vm843_vm3, %v1588_v54, -inf }
 0x7a2   : > { %1671 = vmax.xlane.f32.xlu0 %v1670_v57  ;;  %v2200_v56 = vld [vmem:[%s3718_s18 + $0x10] sm:$0xff]  ;;  %v2201_v57 = vld [vmem:[%s3718_s18 + $0x18] sm:$0xff] }
 0x7a4   : > { %v1666_v58 = vpop.f32.mrb[12].mxu1 }
 0x7a5   : > { %v2952_v59 = vpop.f32.mrb[13].mxu1  ;;  %v1673_v60 = vsel %vm843_vm3, %v1666_v58, -inf }
 0x7a6   : > { %1674 = vmax.xlane.f32.xlu1 %v1673_v60 }
 0x7b7   : > { %1768 = vrot.lane.b32.xlu1 %v3451_v41, %s3251_s20 }
 0x7b8   : > { %1692 = vrot.lane.b32.xlu0 %v3453_v43, %s3251_s20 }
 0x7bb   : > { %1857 = vrot.lane.b32.xlu1 %v3453_v43, %s3252_s24 }
 0x7bf   : > { %1935 = vrot.lane.b32.xlu1 %v3451_v41, %s3252_s24 }
 0x7c3   : > { %1933 = vrot.lane.b32.xlu1 %v3468_v47, %s3253_s13 }
 0x82f   : > { %v1672_v61 = vpop.xlane.xlu0 %1671 }
 0x830   : > { %v1676_v62 = vsub.f32 %v1588_v54, %v1672_v61  ;;  %v2199_v54 = vld [vmem:[%s3718_s18 + $0x8] sm:$0xff] }
 0x832   : > { %v1678_v63 = vmul.f32 1.442695, %v1676_v62 }
 0x833   : > { %v1693_v0 = vpop.permute.xlu0 %1692  ;;  %v1675_v1 = vpop.xlane.xlu1 %1674 }
 0x834   : > { %3164 = vpow2.f32 %v1678_v63  ;;  %v1677_v4 = vsub.f32 %v1666_v58, %v1675_v1  ;;  %2954 = vmatpush3.msra.mxu0 %v1693_v0  ;;  %v3052_v58 = vpack.c.bf16 %v2201_v57, %v2200_v56 }
 0x835   : > { %2963 = vmatprep.subr.mxu0 %v3242_v38 }
 0x836   : > { %v1680_v5 = vmul.f32 1.442695, %v1677_v4 }
 0x837   : > { %v1769_v6 = vpop.permute.xlu1 %1768 }
 0x838   : > { %3166 = vpow2.f32 %v1680_v5  ;;  %2959 = vmatpush3.msra.mxu1 %v1769_v6  ;;  %v2808_v6 = vld [vmem:[%s3719_s14] ss:$0 sm:$0xff] }
 0x839   : > { %2968 = vmatprep.subr.mxu1 %v3242_v38 }
 0x83b   : > { %v1858_v12 = vpop.permute.xlu1 %1857 }
 0x83e   : > { %v3165_v7 = vpop.eup %3164 }
 0x83f   : > { %v1682_v8 = vsel %vm843_vm3, %v3165_v7, 0.0  ;;  %v1936_v16 = vpop.permute.xlu1 %1935 }
 0x840   : > { %1683 = vadd.xlane.f32.xlu0 %v1682_v8 }
 0x842   : > { %v3167_v47 = vpop.eup %3166 }
 0x843   : > { %v1685_v9 = vsel %vm843_vm3, %v3167_v47, 0.0  ;;  %v1934_v18 = vpop.permute.xlu1 %1933 }
 0x844   : > { %1686 = vadd.xlane.f32.xlu0 %v1685_v9 }
 0x85a   : > { %1855 = vrot.lane.b32.xlu0 %v3459_v45, %s3253_s13 }
 0x8cd   : > { %v1684_v10 = vpop.xlane.xlu0 %1683 }
 0x8ce   : > { %3168 = vrcp.f32 %v1684_v10 }
 0x8d1   : > { %v1687_v11 = vpop.xlane.xlu0 %1686 }
 0x8d2   : > { %3170 = vrcp.f32 %v1687_v11 }
 0x8d5   : > { %v1856_v45 = vpop.permute.xlu0 %1855 }
 0x8d8   : > { %v3169_v13 = vpop.eup %3168 }
 0x8d9   : > { %v1690_v14 = vmul.f32 %v3169_v13, %v3165_v7 }
 0x8db   : > { %2956 = vmatmul.mubr.msk.f32.vlgmr.msra.gmra.mrb[8].mxu0 %vm843_vm3, %v1690_v14 }
 0x8dc   : > { %v3171_v15 = vpop.eup %3170  ;;  %2964 = vmatpush3.xpose.msk.msra.mxu0 %vm843_vm3, %v1858_v12  ;;  %2965 = vmatprep.mubr.msk.f32.mxu0 %vm3243_vm2, %v3242_v38 }
 0x8dd   : > { %v1691_v17 = vmul.f32 %v3171_v15, %v3167_v47  ;;  %2973 = vmatprep.subr.mxu0 %v3242_v38  ;;  %v2809_v47 = vld [vmem:[%s682_s2] ss:$0 sm:$0xff] }
 0x8df   : > { %2961 = vmatmul.mubr.msk.f32.vlgmr.msra.gmra.mrb[14].mxu1 %vm843_vm3, %v1691_v17  ;;  %2966 = vmatmul.mubr.msk.f32.vlgmr.msra.gmra.mrb[10].mxu0 %vm843_vm3, %v1856_v45 }
 0x8e0   : > { %2969 = vmatpush3.xpose.msk.msra.mxu1 %vm843_vm3, %v1936_v16  ;;  %2970 = vmatprep.mubr.msk.f32.mxu1 %vm3243_vm2, %v3242_v38 }
 0x8e1   : > { %2978 = vmatprep.subr.mxu1 %v3242_v38  ;;  %2975 = vmatprep.mubr.msk.f32.mxu0 %vm3243_vm2, %v3242_v38 }
 0x8e3   : > { %2971 = vmatmul.mubr.msk.f32.vlgmr.msra.gmra.mrb[16].mxu1 %vm843_vm3, %v1934_v18 }
 0x8e4   : > { %2980 = vmatprep.mubr.msk.f32.mxu1 %vm3243_vm2, %v3242_v38 }
 0x9ae   : > { %v1764_v19 = vpop.f32.mrb[8].mxu0 }
 0x9af   : > { %v2957_v20 = vpop.f32.mrb[9].mxu0 }
 0x9b2   : > { %v1840_v21 = vpop.f32.mrb[14].mxu1  ;;  %v1929_v22 = vpop.f32.mrb[10].mxu0 }
 0x9b3   : > { %v2962_v23 = vpop.f32.mrb[15].mxu1  ;;  %v2967_v24 = vpop.f32.mrb[11].mxu0  ;;  %v2011_v25 = vsel %vm843_vm3, %v1929_v22, -inf }
 0x9b4   : > { %2012 = vmax.xlane.f32.xlu0 %v2011_v25  ;;  %v2353_v23 = vld [vmem:[%s3389_s28] sm:$0xff]  ;;  %v2354_v24 = vld [vmem:[%s3389_s28 + $0x8] sm:$0xff] }
 0x9b5   : > { %v3056_v25 = vpack.c.bf16 %v2354_v24, %v2353_v23 }
 0x9b6   : > { %v2007_v26 = vpop.f32.mrb[16].mxu1 }
 0x9b7   : > { %v2972_v27 = vpop.f32.mrb[17].mxu1  ;;  %v2014_v28 = vsel %vm843_vm3, %v2007_v26, -inf }
 0x9b8   : > { %2015 = vmax.xlane.f32.xlu1 %v2014_v28  ;;  %v2356_v27 = vld [vmem:[%s3389_s28 + $0x18] sm:$0xff] }
 0x9c9   : > { %2109 = vrot.lane.b32.xlu1 %v3451_v41, %s3254_s27 }
 0x9cd   : > { %1505 = vrot.lane.b32.xlu1 %v3533_v51, %s3255_s15 }
 0x9d1   : > { %1507 = vrot.lane.b32.xlu1 %v3535_v53, %s3255_s15  ;;  %v2198_v53 = vld [vmem:[%s3718_s18] sm:$0xff] }
 0x9d2   : > { %v3048_v55 = vpack.c.bf16 %v2199_v54, %v2198_v53 }
 0x9d5   : > { %1848 = vrot.lane.b32.xlu1 %v1840_v21, %s3256_s16 }
 0xa41   : > { %v2013_v38 = vpop.xlane.xlu0 %2012 }
 0xa42   : > { %v2017_v29 = vsub.f32 %v1929_v22, %v2013_v38  ;;  %v2458_v38 = vld [vmem:[%s3399_s17] sm:$0xff] }
 0xa44   : > { %v2019_v30 = vmul.f32 1.442695, %v2017_v29  ;;  %v2459_v29 = vld [vmem:[%s3399_s17 + $0x8] sm:$0xff] }
 0xa45   : > { %v2016_v31 = vpop.xlane.xlu1 %2015 }
 0xa46   : > { %3172 = vpow2.f32 %v2019_v30  ;;  %v2018_v32 = vsub.f32 %v2007_v26, %v2016_v31  ;;  %v2355_v26 = vld [vmem:[%s3389_s28 + $0x10] sm:$0xff]  ;;  %v3064_v31 = vpack.c.bf16 %v2459_v29, %v2458_v38 }
 0xa47   : > { %v3060_v28 = vpack.c.bf16 %v2356_v27, %v2355_v26  ;;  %v2460_v30 = vld [vmem:[%s3399_s17 + $0x10] sm:$0xff] }
 0xa48   : > { %v2021_v33 = vmul.f32 1.442695, %v2018_v32  ;;  %v2461_v32 = vld [vmem:[%s3399_s17 + $0x18] sm:$0xff] }
 0xa49   : > { %v2110_v34 = vpop.permute.xlu1 %2109 }
 0xa4a   : > { %3174 = vpow2.f32 %v2021_v33  ;;  %2979 = vmatpush3.msra.mxu1 %v2110_v34  ;;  %v3068_v33 = vpack.c.bf16 %v2461_v32, %v2460_v30  ;;  %v2462_v34 = vld [vmem:[%s3399_s17 + $0x20] sm:$0xff] }
 0xa4b   : > { %3049 = vmatprep.subr.bf16.mxu1 %v3048_v55 }
 0xa4d   : > { %v1506_v41 = vpop.permute.xlu1 %1505 }
 0xa4e   : > { %1512 = vst.msk [vmem:[#allocation2] sm:$0xff] %vm1511_vm4, %v1506_v41  ;;  %v2463_v41 = vld [vmem:[%s3399_s17 + $0x28] sm:$0xff] }
 0xa50   : > { %v3173_v35 = vpop.eup %3172 }
 0xa51   : > { %v1508_v36 = vpop.permute.xlu1 %1507  ;;  %v2023_v37 = vsel %vm843_vm3, %v3173_v35, 0.0 }
 0xa52   : > { %1513 = vst.msk [vmem:[#allocation2 + $0x8] sm:$0xff] %vm1511_vm4, %v1508_v36  ;;  %2024 = vadd.xlane.f32.xlu0 %v2023_v37 }
 0xa54   : > { %v3175_v39 = vpop.eup %3174 }
 0xa55   : > { %v1849_v40 = vpop.permute.xlu1 %1848  ;;  %v2026_v42 = vsel %vm843_vm3, %v3175_v39, 0.0 }
 0xa56   : > { %1854 = vst.msk [vmem:[#allocation2 + $0x8] sm:$0xff] %vm1852_vm5, %v1849_v40  ;;  %2027 = vadd.xlane.f32.xlu0 %v2026_v42 }
 0xa6c   : > { %2033 = vrot.lane.b32.xlu0 %v3453_v43, %s3254_s27 }
 0xa70   : > { %1846 = vrot.lane.b32.xlu0 %v1764_v19, %s3256_s16 }
 0xadf   : > { %v2025_v44 = vpop.xlane.xlu0 %2024 }
 0xae0   : > { %3176 = vrcp.f32 %v2025_v44 }
 0xae3   : > { %v2028_v46 = vpop.xlane.xlu0 %2027 }
 0xae4   : > { %3178 = vrcp.f32 %v2028_v46 }
 0xae7   : > { %v2034_v48 = vpop.permute.xlu0 %2033 }
 0xae8   : > { %2974 = vmatpush3.msra.mxu0 %v2034_v48  ;;  %v2810_v48 = vld [vmem:[%s652_s1] ss:$0 sm:$0xff] }
 0xae9   : > { %3065 = vmatprep.subr.bf16.mxu0 %v3064_v31 }
 0xaea   : > { %v3177_v49 = vpop.eup %3176 }
 0xaeb   : > { %v2031_v50 = vmul.f32 %v3177_v49, %v3173_v35  ;;  %v1847_v51 = vpop.permute.xlu0 %1846  ;;  %v3072_v35 = vpack.c.bf16 %v2463_v41, %v2462_v34 }
 0xaec   : > { %1853 = vst.msk [vmem:[#allocation2] sm:$0xff] %vm1852_vm5, %v1847_v51 }
 0xaed   : > { %2976 = vmatmul.mubr.msk.f32.vlgmr.msra.gmra.mrb[12].mxu0 %vm843_vm3, %v2031_v50  ;;  %v2811_v50 = vld [vmem:[%s655_s22] ss:$0 sm:$0xff] }
 0xaee   : > { %v3179_v52 = vpop.eup %3178  ;;  %3067 = vmatpush3.bf16.msra.mxu0 %v3064_v31 }
 0xaef   : > { %v2032_v43 = vmul.f32 %v3179_v52, %v3175_v39  ;;  %3069 = vmatprep.subr.bf16.mxu0 %v3068_v33 }
 0xaf1   : > { %2981 = vmatmul.mubr.msk.f32.vlgmr.msra.gmra.mrb[18].mxu1 %vm843_vm3, %v2032_v43 }
 0xaf2   : > { %3051 = vmatpush3.bf16.msra.mxu1 %v3048_v55  ;;  %3071 = vmatpush3.bf16.msra.mxu0 %v3068_v33 }
 0xaf3   : > { %3053 = vmatprep.subr.bf16.mxu1 %v3052_v58  ;;  %3073 = vmatprep.subr.bf16.mxu0 %v3072_v35 }
 0xaf6   : > { %3055 = vmatpush3.bf16.msra.mxu1 %v3052_v58  ;;  %3075 = vmatpush3.bf16.msra.mxu0 %v3072_v35  ;;  %v2464_v58 = vld [vmem:[%s3399_s17 + $0x30] sm:$0xff] }
 0xaf7   : > { %3057 = vmatprep.subr.bf16.mxu1 %v3056_v25 }
 0xbc0   : > { %v2105_v59 = vpop.f32.mrb[12].mxu0 }
 0xbc1   : > { %2187 = vrot.lane.b32.xlu0 %v2105_v59, %s3257_s19  ;;  %v2977_v60 = vpop.f32.mrb[13].mxu0  ;;  %v2465_v59 = vld [vmem:[%s3399_s17 + $0x38] sm:$0xff] }
 0xbc2   : > { %v3076_v60 = vpack.c.bf16 %v2465_v59, %v2464_v58 }
 0xbc4   : > { %v2181_v61 = vpop.f32.mrb[18].mxu1  ;;  %3077 = vmatprep.subr.bf16.mxu0 %v3076_v60 }
 0xbc5   : > { %2189 = vrot.lane.b32.xlu1 %v2181_v61, %s3257_s19  ;;  %v2982_v62 = vpop.f32.mrb[19].mxu1  ;;  %3079 = vmatpush3.bf16.msra.mxu0 %v3076_v60  ;;  %v2466_v61 = vld [vmem:[%s3399_s17 + $0x40] sm:$0xff] }
 0xbc6   : > { %v2467_v62 = vld [vmem:[%s3399_s17 + $0x48] sm:$0xff] }
 0xc33   : > { %v2188_v63 = vpop.permute.xlu0 %2187 }
 0xc34   : > { %2194 = vst.msk [vmem:[#allocation2] sm:$0xff] %vm2193_vm6, %v2188_v63  ;;  %v3080_v63 = vpack.c.bf16 %v2467_v62, %v2466_v61 }
 0xc36   : > { %3081 = vmatprep.subr.bf16.mxu0 %v3080_v63 }
 0xc37   : > { %v2190_v0 = vpop.permute.xlu1 %2189  ;;  %3083 = vmatpush3.bf16.msra.mxu0 %v3080_v63 }
 0xc38   : > { %2195 = vst.msk [vmem:[#allocation2 + $0x8] sm:$0xff] %vm2193_vm6, %v2190_v0  ;;  %v2468_v0 = vld [vmem:[%s3399_s17 + $0x50] sm:$0xff] }
 0xc3b   : > { %v2196_v1 = vld [vmem:[#allocation2] sm:$0xff] }
 0xc3c   : > { %2991 = vmatprep.mubr.msk.f32.mxu1 %vm702_vm1, %v2196_v1  ;;  %v2469_v1 = vld [vmem:[%s3399_s17 + $0x58] sm:$0xff] }
 0xc3f   : > { %v2197_v4 = vld [vmem:[#allocation2 + $0x8] sm:$0xff] }
 0xc40   : > { %2992 = vmatmul.mubr.msk.f32.vlgmr.msra.gmra.mrb[20].mxu1 %vm702_vm1, %v2197_v4  ;;  %v3084_v4 = vpack.c.bf16 %v2469_v1, %v2468_v0 }
 0xc41   : > { %3059 = vmatpush3.bf16.msra.mxu1 %v3056_v25 }
 0xc42   : > { %3061 = vmatprep.subr.bf16.mxu1 %v3060_v28  ;;  %3085 = vmatprep.subr.bf16.mxu0 %v3084_v4 }
 0xc43   : > { %3087 = vmatpush3.bf16.msra.mxu0 %v3084_v4 }
 0xc45   : > { %3063 = vmatpush3.bf16.msra.mxu1 %v3060_v28 }
 0xd13   : > { %v2993_v5 = vpop.f32.mrb[20].mxu1 }
 0xd14   : > { %v2284_v7 = vadd.f32 %v2993_v5, %v3414_v3  ;;  %v2274_v8 = vpop.f32.mrb[21].mxu1  ;;  %v2470_v5 = vld [vmem:[%s3399_s17 + $0x60] sm:$0xff] }
 0xd15   : > { %v2283_v9 = vadd.f32 %v2274_v8, %v3412_v2  ;;  %v2472_v8 = vld [vmem:[%s3399_s17 + $0x70] sm:$0xff] }
 0xd16   : > { %v2293_v10 = vadd.f32 %v2808_v6, %v2284_v7 }
 0xd17   : > { %v2292_v11 = vadd.f32 %v2808_v6, %v2283_v9  ;;  %v2471_v6 = vld [vmem:[%s3399_s17 + $0x68] sm:$0xff] }
 0xd18   : > { %v2302_v12 = vadd.f32 %v2809_v47, %v2293_v10  ;;  %v2310_v13 = vsel %vm702_vm1, %v2293_v10, 0.0  ;;  %v3088_v7 = vpack.c.bf16 %v2471_v6, %v2470_v5 }
 0xd19   : > { %v2301_v14 = vadd.f32 %v2809_v47, %v2292_v11  ;;  %2311 = vadd.xlane.f32.xlu1 %v2310_v13  ;;  %v2307_v15 = vsel %vm702_vm1, %v2292_v11, 0.0  ;;  %v2473_v47 = vld [vmem:[%s3399_s17 + $0x78] sm:$0xff]  ;;  %s3720_s17 = sld [smem:[#allocation9_spill]] }
 0xd1a   : > { %2304 = vst.msk [vmem:[#allocation4 + $0x8] sm:$0xff] %vm702_vm1, %v2302_v12  ;;  %2308 = vadd.xlane.f32.xlu0 %v2307_v15  ;;  %3089 = vmatprep.subr.bf16.mxu0 %v3088_v7  ;;  %v3092_v9 = vpack.c.bf16 %v2473_v47, %v2472_v8 }
 0xd1b   : > { %2303 = vst.msk [vmem:[#allocation4] sm:$0xff] %vm702_vm1, %v2301_v14  ;;  %3091 = vmatpush3.bf16.msra.mxu0 %v3088_v7 }
 0xd1c   : > { %3093 = vmatprep.subr.bf16.mxu0 %v3092_v9 }
 0xd1f   : > { %3095 = vmatpush3.bf16.msra.mxu0 %v3092_v9  ;;  %s3721_s24 = sadd.s32 4294967295, %s3720_s17  }
 0xd20   : > { %p3648_p6 = scmp.eq.s32.totalorder %s3721_s24, 1 }
 0xd22   : > { %v2456_v25 = vld [vmem:[#allocation4] sm:$0xff] }
 0xda6   : > { %v2312_v3 = vpop.xlane.xlu1 %2311 }
 0xda7   : > { %v2314_v2 = vmul.f32 0.03125, %v2312_v3  ;;  %v2309_v16 = vpop.xlane.xlu0 %2308 }
 0xda8   : > { %v2313_v17 = vmul.f32 0.03125, %v2309_v16 }
 0xda9   : > { %v2316_v45 = vsub.f32 %v2293_v10, %v2314_v2  ;;  %v2812_v10 = vld [vmem:[%s669_s26] ss:$0 sm:$0xff]  ;;  %s2569_s26 = sshll.u32 %s3258_s30, 4  ;;  %s2570_s26 = int_to_ptr.vmem [resolvable:$true] %s2569_s26 }
 0xdaa   : > { %v2315_v18 = vsub.f32 %v2292_v11, %v2313_v17  ;;  %s3188_s27 = scalar_lea.vmem %s2570_s26, 256  ;;  %p3195_p10 = scmp.lt.s32.totalorder %s2570_s26, %s2570_s26 }
 0xdab   : > { %v2318_v21 = vmul.f32 %v2316_v45, %v2316_v45  ;;  %p3189_p7 = scmp.ne.s32.totalorder %s2570_s26, %s3188_s27  ;;  %p3196_p11 = scmp.lt.s32.totalorder %s3188_s27, %s3188_s27 }
 0xdac   : > { %v2317_v19 = vmul.f32 %v2315_v18, %v2315_v18 }
 0xdad   : > { %v2322_v22 = vsel %vm702_vm1, %v2318_v21, 0.0  ;;  %p3190_p8 = pnand %p3189_p7, %p3648_p6  ;;  %p3197_p12 = por %p3196_p11, %p3195_p10 }
 0xdae   : > { %v2319_v20 = vsel %vm702_vm1, %v2317_v19, 0.0 }
 0xdaf   : > { %2320 = vadd.xlane.f32.xlu0 %v2319_v20  ;;  %p3191_p9 = pneg %p3190_p8 }
 0xdb1   : > { %p3198_p13 = pnand %p3197_p12, %p3191_p9 }
 0xdb3   : > { %2323 = vadd.xlane.f32.xlu0 %v2322_v22  ;;  %v2457_v22 = vld [vmem:[#allocation4 + $0x8] sm:$0xff] }
 0xe3c   : > { %v2321_v36 = vpop.xlane.xlu0 %2320 }
 0xe3d   : > { %v2325_v37 = vmul.f32 0.03125, %v2321_v36 }
 0xe3f   : > { %v2327_v39 = vadd.f32 1e-05, %v2325_v37 }
 0xe40   : > { %v2324_v40 = vpop.xlane.xlu0 %2323 }
 0xe41   : > { %3180 = vrsqrt.f32 %v2327_v39  ;;  %v2326_v42 = vmul.f32 0.03125, %v2324_v40 }
 0xe43   : > { %v2328_v44 = vadd.f32 1e-05, %v2326_v42 }
 0xe45   : > { %3182 = vrsqrt.f32 %v2328_v44 }
 0xe4b   : > { %v3181_v46 = vpop.eup %3180 }
 0xe4c   : > { %v2331_v49 = vmul.f32 %v3181_v46, %v2315_v18 }
 0xe4e   : > { %v2339_v51 = vmul.f32 %v2810_v48, %v2331_v49 }
 0xe4f   : > { %v3183_v52 = vpop.eup %3182 }
 0xe50   : > { %v2347_v43 = vadd.f32 %v2811_v50, %v2339_v51  ;;  %v2332_v53 = vmul.f32 %v3183_v52, %v2316_v45 }
 0xe52   : > { %2349 = vst.msk [vmem:[#allocation3] sm:$0xff] %vm702_vm1, %v2347_v43  ;;  %v2340_v54 = vmul.f32 %v2810_v48, %v2332_v53 }
 0xe54   : > { %v2348_v55 = vadd.f32 %v2811_v50, %v2340_v54 }
 0xe56   : > { %2350 = vst.msk [vmem:[#allocation3 + $0x8] sm:$0xff] %vm702_vm1, %v2348_v55 }
 0xe59   : > { %v2351_v56 = vld [vmem:[#allocation3] sm:$0xff] }
 0xe5a   : > { %3002 = vmatprep.mubr.msk.f32.mxu1 %vm702_vm1, %v2351_v56 }
 0xe5d   : > { %v2352_v57 = vld [vmem:[#allocation3 + $0x8] sm:$0xff] }
 0xe5e   : > { %3003 = vmatmul.mubr.msk.f32.vlgmr.msra.gmra.mrb[22].mxu1 %vm702_vm1, %v2352_v57 }
 0xf31   : > { %v3004_v11 = vpop.f32.mrb[22].mxu1 }
 0xf32   : > { %v2443_v12 = vadd.f32 %v3004_v11, %v2812_v10  ;;  %v2437_v13 = vpop.f32.mrb[23].mxu1 }
 0xf33   : > { %v2438_v14 = vadd.f32 %v2812_v10, %v2437_v13 }
 0xf34   : > { %v2449_v15 = vmul.f32 0.70710677, %v2443_v12  ;;  %v2447_v19 = vmul.f32 0.5, %v2443_v12 }
 0xf35   : > { %v2448_v3 = vmul.f32 0.70710677, %v2438_v14  ;;  %v2446_v45 = vmul.f32 0.5, %v2438_v14 }
 0xf36   : > { %3184 = verf.f32 %v2449_v15 }
 0xf37   : > { %3186 = verf.f32 %v2448_v3 }
 0xf40   : > { %v3185_v2 = vpop.eup %3184 }
 0xf41   : > { %v3187_v16 = vpop.eup %3186  ;;  %v2453_v17 = vadd.f32 1.0, %v3185_v2 }
 0xf42   : > { %v2452_v18 = vadd.f32 1.0, %v3187_v16 }
 0xf43   : > { %v2455_v21 = vmul.f32 %v2453_v17, %v2447_v19 }
 0xf44   : > { %v2454_v20 = vmul.f32 %v2452_v18, %v2446_v45 }
 0xf46   : > { %3037 = vmatprep.mubr.f32.mxu0 %v2454_v20 }
 0xf47   : > { %3038 = vmatmul.mubr.f32.vlgmr.msra.gmra.mrb[14].mxu0 %v2455_v21 }
0x101a   : > { %v3039_v23 = vpop.f32.mrb[14].mxu0 }
0x101b   : > { %v2550_v24 = vadd.f32 %v3039_v23, %v2457_v22  ;;  %v2540_v26 = vpop.f32.mrb[15].mxu0 }
0x101c   : > { %v2549_v27 = vadd.f32 %v2540_v26, %v2456_v25 }
0x101d   : > { %2552 = vst.msk [vmem:[#allocation4 + $0x8] sm:$0xff] %vm702_vm1, %v2550_v24 }
0x101e   : > { %2551 = vst.msk [vmem:[#allocation4] sm:$0xff] %vm702_vm1, %v2549_v27 }
0x1024   : > { %v2557_v28 = vld [vmem:[#allocation4 + $0x8] sm:$0xff] }
0x1025   : > { %v2556_v38 = vld [vmem:[#allocation4] sm:$0xff]  ;;  %2559 = vst.msk [vmem:[#allocation5 + $0x8] sm:$0xff] %vm702_vm1, %v2557_v28 }
0x1026   : > { %2558 = vst.msk [vmem:[#allocation5] sm:$0xff] %vm702_vm1, %v2556_v38 }
0x1027   : > { %3201 = shalt.err (!%p3198_p13)
}
0x1028   : > { %s3723_s19 = sld [smem:[#allocation15_spill]] }
0x102e   : > { %s3202_s21 = scalar_lea.hbm %s3723_s19, 256 }
0x102f   : > { %p3203_p0 = scmp.ne.s32.totalorder %s3723_s19, %s3202_s21  ;;  %p3208_p3 = scmp.lt.u32.totalorder %s3202_s21, %s3723_s19 }
0x1031   : > { %p3204_p1 = pnand %p3203_p0, %p3648_p6 }
0x1033   : > { %p3205_p2 = pneg %p3204_p1 }
0x1035   : > { %p3210_p4 = pnand %p3208_p3, %p3205_p2 }
0x1037   : > { %3213 = shalt.err (!%p3210_p4)
}
0x1038   : > { %s3259_s28 = smov 128  }
0x1039   : > { %3097 = dma.vmem_to_hbm [thread:$0]  (%p3648_p6), %s2570_s26, 256, %s3723_s19, [#allocation6], %s3259_s28, %s3259_s28, %s3255_s15  }
0x103a   : > { %3227 = dma.done.wait (%p3648_p6), [#allocation6], 256  }
0x103b   : > { %3229 = vsyncadd (%p3648_p6), [#allocation6], 4294967040 }
0x103c PF: > { %s3724_s20 = sld [smem:[#allocation9_spill]]  ;;  %s3725_s25 = sld [smem:[#allocation8_spill]] }
0x103d   : > { %s3726_s26 = sld [smem:[#allocation10_spill]] }
0x1042   : > { %s24_s27 = sadd.s32 1, %s3724_s20  }
0x1043   : > { %p21_p5 = scmp.ge.s32.totalorder %s24_s27, 4  }
0x1045   :  { %23 = sbr.rel (!%p21_p5) target bundleno = 7 (0x7), region = 148 }
0x104c   :  { %2585 = vsyncpa [#allocation6], 1 }
0x104d   :  { %2587 = vsyncpa [#allocation6 + $0x1], 1 }

</bundles_post_ra>
